<compile_context>
chip_gen: v6e
topology: v6e:2x2x1
jax: 0.10.0
libtpu: 0.0.40
codegen_flags: <defaults>
</compile_context>

<pallas_src>
import jax
import jax.numpy as jnp
from jax.experimental import pallas as pl
from jax.experimental.pallas import tpu as pltpu

# --- module hyper-parameters (water_state_dim / clicks_size are not defined
#     in the snippet; chosen small & fixed here) -------------------------------
Z_SIZE = 100
WATER_STATE_DIM = 32
CLICKS_SIZE = 64
G_DIM = 256
IN_DIM = Z_SIZE + WATER_STATE_DIM                       # 132
DIMS = (IN_DIM, G_DIM, 2 * G_DIM, 4 * G_DIM, CLICKS_SIZE)  # 132,256,512,1024,64
OUT_PAD = 128                                           # lane-dense output slab

BN_EPS = 1e-5
LEAKY_SLOPE = 0.2


def _leaky_relu(x):
    return jnp.where(x > 0, x, LEAKY_SLOPE * x)


def generator_kernel(z_ref, y_ref,
                     w1z_ref, w1y_ref, b1_ref,
                     w2_ref, b2_ref,
                     w3_ref, b3_ref,
                     w4_ref, b4_ref,
                     out_ref):
    """Fused 4-layer MLP. Weights bf16 (VMEM-resident), activations f32."""
    # block 1 (no BN): split matmul replaces the concat of (z, y).
    h = (jnp.dot(z_ref[...].astype(jnp.bfloat16), w1z_ref[...],
                 preferred_element_type=jnp.float32)
         + jnp.dot(y_ref[...].astype(jnp.bfloat16), w1y_ref[...],
                   preferred_element_type=jnp.float32)
         + b1_ref[...])
    h = _leaky_relu(h)

    # block 2: Linear (BN pre-folded into w/b) -> LeakyReLU ; Dropout = id (eval)
    h = jnp.dot(h.astype(jnp.bfloat16), w2_ref[...],
                preferred_element_type=jnp.float32) + b2_ref[...]
    h = _leaky_relu(h)

    # block 3: Linear (BN pre-folded) -> LeakyReLU ; Dropout = id (eval)
    h = jnp.dot(h.astype(jnp.bfloat16), w3_ref[...],
                preferred_element_type=jnp.float32) + b3_ref[...]
    h = _leaky_relu(h)

    # output head: Linear -> Tanh (zero-padded to 128 output lanes)
    o = jnp.dot(h.astype(jnp.bfloat16), w4_ref[...],
                preferred_element_type=jnp.float32) + b4_ref[...]
    out_ref[...] = jnp.tanh(o)


def init_params(key):
    """Deterministic parameter init (PyTorch-style uniform for Linear)."""
    params = {}
    ks = jax.random.split(key, 16)
    ki = iter(range(16))

    def linear(kw, kb, fan_in, fan_out):
        bound = 1.0 / jnp.sqrt(jnp.float32(fan_in))
        w = jax.random.uniform(kw, (fan_in, fan_out), jnp.float32, -bound, bound)
        b = jax.random.uniform(kb, (1, fan_out), jnp.float32, -bound, bound)
        return w, b

    params["w1"], params["b1"] = linear(ks[next(ki)], ks[next(ki)], DIMS[0], DIMS[1])
    params["w2"], params["b2"] = linear(ks[next(ki)], ks[next(ki)], DIMS[1], DIMS[2])
    params["w3"], params["b3"] = linear(ks[next(ki)], ks[next(ki)], DIMS[2], DIMS[3])
    params["w4"], params["b4"] = linear(ks[next(ki)], ks[next(ki)], DIMS[3], DIMS[4])

    def bn(kg, kb, km, kv, dim):
        gamma = 1.0 + 0.1 * jax.random.normal(kg, (1, dim), jnp.float32)
        beta = 0.1 * jax.random.normal(kb, (1, dim), jnp.float32)
        rmean = 0.1 * jax.random.normal(km, (1, dim), jnp.float32)
        rvar = jax.random.uniform(kv, (1, dim), jnp.float32, 0.5, 1.5)
        return gamma, beta, rmean, rvar

    params["g2"], params["be2"], params["m2"], params["v2"] = bn(
        ks[next(ki)], ks[next(ki)], ks[next(ki)], ks[next(ki)], DIMS[2])
    params["g3"], params["be3"], params["m3"], params["v3"] = bn(
        ks[next(ki)], ks[next(ki)], ks[next(ki)], ks[next(ki)], DIMS[3])
    return params


def fold_params(params, weight_dtype=jnp.bfloat16):
    """Fold eval-mode BN into the Linears, split w1, pad the head, cast weights.

    Done once per parameter set (XLA side), not per kernel invocation.
    """
    def fold(w, b, g, be, m, v):
        s = g * jax.lax.rsqrt(v + BN_EPS)          # (1, out)
        return w * s, (b - m) * s + be

    w2f, b2f = fold(params["w2"], params["b2"], params["g2"], params["be2"],
                    params["m2"], params["v2"])
    w3f, b3f = fold(params["w3"], params["b3"], params["g3"], params["be3"],
                    params["m3"], params["v3"])

    w1z = params["w1"][:Z_SIZE]                    # (100, 256)
    w1y = params["w1"][Z_SIZE:]                    # ( 32, 256)
    w4p = jnp.pad(params["w4"], ((0, 0), (0, OUT_PAD - CLICKS_SIZE)))
    b4p = jnp.pad(params["b4"], ((0, 0), (0, OUT_PAD - CLICKS_SIZE)))

    cast = lambda w: w.astype(weight_dtype)
    f32 = lambda b: b.astype(jnp.float32)
    return (cast(w1z), cast(w1y), f32(params["b1"]),
            cast(w2f), f32(b2f),
            cast(w3f), f32(b3f),
            cast(w4p), f32(b4p))


def generator_forward(z, y, kparams):
    """z: (B, Z_SIZE), y: (B, WATER_STATE_DIM) -> (B, CLICKS_SIZE)."""
    z = z.astype(jnp.float32)
    y = y.astype(jnp.float32)
    b = z.shape[0]

    # Batch tile: MXU-matched 256 rows when the batch is large, otherwise a
    # single 8-padded tile (f32 activations -> multiple of 8 sublanes).
    tb = 256 if b > 256 else max(8, ((b + 7) // 8) * 8)
    b_pad = ((b + tb - 1) // tb) * tb
    if b_pad != b:
        z = jnp.pad(z, ((0, b_pad - b), (0, 0)))
        y = jnp.pad(y, ((0, b_pad - b), (0, 0)))
    grid = (b_pad // tb,)

    (w1z, w1y, b1, w2, b2, w3, b3, w4, b4) = kparams

    def act_spec(f):
        return pl.BlockSpec((tb, f), lambda i: (i, 0))

    def full_spec(a):
        # Full-array block, same block for every grid step (stays VMEM-resident).
        return pl.BlockSpec(a.shape, lambda i: (0, 0))

    out = pl.pallas_call(
        generator_kernel,
        out_shape=jax.ShapeDtypeStruct((b_pad, OUT_PAD), jnp.float32),
        grid=grid,
        in_specs=[
            act_spec(Z_SIZE), act_spec(WATER_STATE_DIM),
            full_spec(w1z), full_spec(w1y), full_spec(b1),
            full_spec(w2), full_spec(b2),
            full_spec(w3), full_spec(b3),
            full_spec(w4), full_spec(b4),
        ],
        out_specs=pl.BlockSpec((tb, OUT_PAD), lambda i: (i, 0)),
        compiler_params=pltpu.CompilerParams(
            dimension_semantics=("parallel",),
            vmem_limit_bytes=16 << 20,
        ),
    )(z, y, w1z, w1y, b1, w2, b2, w3, b3, w4, b4)

    return out[:b, :CLICKS_SIZE]


def reference_forward(z, y, params):
    """Pure-JAX f32 reference (un-folded params) for sanity checking."""
    x = jnp.concatenate([z, y], axis=1).astype(jnp.float32)
    h = _leaky_relu(x @ params["w1"] + params["b1"])
    h = h @ params["w2"] + params["b2"]
    h = (h - params["m2"]) * jax.lax.rsqrt(params["v2"] + BN_EPS) * params["g2"] + params["be2"]
    h = _leaky_relu(h)
    h = h @ params["w3"] + params["b3"]
    h = (h - params["m3"]) * jax.lax.rsqrt(params["v3"] + BN_EPS) * params["g3"] + params["be3"]
    h = _leaky_relu(h)
    return jnp.tanh(h @ params["w4"] + params["b4"])


if __name__ == "__main__":
    key = jax.random.PRNGKey(0)
    k_param, k_z, k_y = jax.random.split(key, 3)

    params = init_params(k_param)
    kparams = fold_params(params)          # BN-folded, bf16, padded head

    batch = 2
    # Generator.generate samples z ~ U(-1, 1); game_state is the conditioning input.
    z = jax.random.uniform(k_z, (batch, Z_SIZE), jnp.float32, -1.0, 1.0)
    y = jax.random.normal(k_y, (batch, WATER_STATE_DIM), jnp.float32)

    out = generator_forward(z, y, kparams)
    out = jax.block_until_ready(out)

    ref = reference_forward(z, y, params)
    assert out.shape == (batch, CLICKS_SIZE)
    # bf16 weights -> loosened tolerance vs the f32 reference.
    assert jnp.allclose(out, ref, atol=2e-2, rtol=0.0), "mismatch vs pure-JAX reference"

    print("KERNEL_OK")
</pallas_src>

<mosaic_0001>
module attributes {stable_mosaic.version = 11 : i64} {
  func.func @generator_kernel(%arg0: i32, %arg1: memref<8x100xf32, #tpu.memory_space<vmem>>, %arg2: memref<8x32xf32, #tpu.memory_space<vmem>>, %arg3: memref<100x256xbf16, #tpu.memory_space<vmem>>, %arg4: memref<32x256xbf16, #tpu.memory_space<vmem>>, %arg5: memref<1x256xf32, #tpu.memory_space<vmem>>, %arg6: memref<256x512xbf16, #tpu.memory_space<vmem>>, %arg7: memref<1x512xf32, #tpu.memory_space<vmem>>, %arg8: memref<512x1024xbf16, #tpu.memory_space<vmem>>, %arg9: memref<1x1024xf32, #tpu.memory_space<vmem>>, %arg10: memref<1024x128xbf16, #tpu.memory_space<vmem>>, %arg11: memref<1x128xf32, #tpu.memory_space<vmem>>, %arg12: memref<8x128xf32, #tpu.memory_space<vmem>>) attributes {dimension_semantics = [#tpu.dimension_semantics<parallel>], iteration_bounds = array<i64: 1>, scalar_prefetch = 0 : i64, scratch_operands = 0 : i64, tpu.core_type = #tpu.core_type<tc>, window_params = [{transform_indices = @transform_0, window_bounds = array<i64: 8, 100>}, {transform_indices = @transform_1, window_bounds = array<i64: 8, 32>}, {pipeline_mode = #tpu.pipeline_mode<synchronous>, transform_indices = @transform_2, window_bounds = array<i64: 100, 256>}, {pipeline_mode = #tpu.pipeline_mode<synchronous>, transform_indices = @transform_3, window_bounds = array<i64: 32, 256>}, {pipeline_mode = #tpu.pipeline_mode<synchronous>, transform_indices = @transform_4, window_bounds = array<i64: 1, 256>}, {pipeline_mode = #tpu.pipeline_mode<synchronous>, transform_indices = @transform_5, window_bounds = array<i64: 256, 512>}, {pipeline_mode = #tpu.pipeline_mode<synchronous>, transform_indices = @transform_6, window_bounds = array<i64: 1, 512>}, {pipeline_mode = #tpu.pipeline_mode<synchronous>, transform_indices = @transform_7, window_bounds = array<i64: 512, 1024>}, {pipeline_mode = #tpu.pipeline_mode<synchronous>, transform_indices = @transform_8, window_bounds = array<i64: 1, 1024>}, {pipeline_mode = #tpu.pipeline_mode<synchronous>, transform_indices = @transform_9, window_bounds = array<i64: 1024, 128>}, {pipeline_mode = #tpu.pipeline_mode<synchronous>, transform_indices = @transform_10, window_bounds = array<i64: 1, 128>}, {transform_indices = @transform_11, window_bounds = array<i64: 8, 128>}]} {
    %c0 = arith.constant 0 : index
    %c0_0 = arith.constant 0 : index
    %0 = vector.load %arg1[%c0, %c0_0] : memref<8x100xf32, #tpu.memory_space<vmem>>, vector<8x100xf32>
    %1 = arith.truncf %0 : vector<8x100xf32> to vector<8x100xbf16>
    %c0_1 = arith.constant 0 : index
    %c0_2 = arith.constant 0 : index
    %2 = vector.load %arg3[%c0_1, %c0_2] : memref<100x256xbf16, #tpu.memory_space<vmem>>, vector<100x256xbf16>
    %cst = arith.constant dense<0.000000e+00> : vector<8x256xf32>
    %3 = tpu.matmul %1, %2, %cst {dimension_numbers = #tpu.dot_dimension_numbers<[1], [0], [0], [1], [0, 0, 1, 1], [], []>} : vector<8x100xbf16>, vector<100x256xbf16>, vector<8x256xf32> -> vector<8x256xf32>
    %c0_3 = arith.constant 0 : index
    %c0_4 = arith.constant 0 : index
    %4 = vector.load %arg2[%c0_3, %c0_4] : memref<8x32xf32, #tpu.memory_space<vmem>>, vector<8x32xf32>
    %5 = arith.truncf %4 : vector<8x32xf32> to vector<8x32xbf16>
    %c0_5 = arith.constant 0 : index
    %c0_6 = arith.constant 0 : index
    %6 = vector.load %arg4[%c0_5, %c0_6] : memref<32x256xbf16, #tpu.memory_space<vmem>>, vector<32x256xbf16>
    %cst_7 = arith.constant dense<0.000000e+00> : vector<8x256xf32>
    %7 = tpu.matmul %5, %6, %cst_7 {dimension_numbers = #tpu.dot_dimension_numbers<[1], [0], [0], [1], [0, 0, 1, 1], [], []>} : vector<8x32xbf16>, vector<32x256xbf16>, vector<8x256xf32> -> vector<8x256xf32>
    %8 = arith.addf %3, %7 : vector<8x256xf32>
    %c0_8 = arith.constant 0 : index
    %c0_9 = arith.constant 0 : index
    %9 = vector.load %arg5[%c0_8, %c0_9] : memref<1x256xf32, #tpu.memory_space<vmem>>, vector<1x256xf32>
    %10 = vector.broadcast %9 : vector<1x256xf32> to vector<8x256xf32>
    %11 = arith.addf %8, %10 : vector<8x256xf32>
    %cst_10 = arith.constant 0.000000e+00 : f32
    %12 = vector.broadcast %cst_10 : f32 to vector<8x256xf32>
    %13 = arith.cmpf ogt, %11, %12 : vector<8x256xf32>
    %cst_11 = arith.constant 2.000000e-01 : f32
    %14 = vector.broadcast %cst_11 : f32 to vector<8x256xf32>
    %15 = arith.mulf %14, %11 : vector<8x256xf32>
    %16 = arith.select %13, %11, %15 : vector<8x256xi1>, vector<8x256xf32>
    %17 = arith.truncf %16 : vector<8x256xf32> to vector<8x256xbf16>
    %c0_12 = arith.constant 0 : index
    %c0_13 = arith.constant 0 : index
    %18 = vector.load %arg6[%c0_12, %c0_13] : memref<256x512xbf16, #tpu.memory_space<vmem>>, vector<256x512xbf16>
    %cst_14 = arith.constant dense<0.000000e+00> : vector<8x512xf32>
    %19 = tpu.matmul %17, %18, %cst_14 {dimension_numbers = #tpu.dot_dimension_numbers<[1], [0], [0], [1], [0, 0, 1, 1], [], []>} : vector<8x256xbf16>, vector<256x512xbf16>, vector<8x512xf32> -> vector<8x512xf32>
    %c0_15 = arith.constant 0 : index
    %c0_16 = arith.constant 0 : index
    %20 = vector.load %arg7[%c0_15, %c0_16] : memref<1x512xf32, #tpu.memory_space<vmem>>, vector<1x512xf32>
    %21 = vector.broadcast %20 : vector<1x512xf32> to vector<8x512xf32>
    %22 = arith.addf %19, %21 : vector<8x512xf32>
    %cst_17 = arith.constant 0.000000e+00 : f32
    %23 = vector.broadcast %cst_17 : f32 to vector<8x512xf32>
    %24 = arith.cmpf ogt, %22, %23 : vector<8x512xf32>
    %cst_18 = arith.constant 2.000000e-01 : f32
    %25 = vector.broadcast %cst_18 : f32 to vector<8x512xf32>
    %26 = arith.mulf %25, %22 : vector<8x512xf32>
    %27 = arith.select %24, %22, %26 : vector<8x512xi1>, vector<8x512xf32>
    %28 = arith.truncf %27 : vector<8x512xf32> to vector<8x512xbf16>
    %c0_19 = arith.constant 0 : index
    %c0_20 = arith.constant 0 : index
    %29 = vector.load %arg8[%c0_19, %c0_20] : memref<512x1024xbf16, #tpu.memory_space<vmem>>, vector<512x1024xbf16>
    %cst_21 = arith.constant dense<0.000000e+00> : vector<8x1024xf32>
    %30 = tpu.matmul %28, %29, %cst_21 {dimension_numbers = #tpu.dot_dimension_numbers<[1], [0], [0], [1], [0, 0, 1, 1], [], []>} : vector<8x512xbf16>, vector<512x1024xbf16>, vector<8x1024xf32> -> vector<8x1024xf32>
    %c0_22 = arith.constant 0 : index
    %c0_23 = arith.constant 0 : index
    %31 = vector.load %arg9[%c0_22, %c0_23] : memref<1x1024xf32, #tpu.memory_space<vmem>>, vector<1x1024xf32>
    %32 = vector.broadcast %31 : vector<1x1024xf32> to vector<8x1024xf32>
    %33 = arith.addf %30, %32 : vector<8x1024xf32>
    %cst_24 = arith.constant 0.000000e+00 : f32
    %34 = vector.broadcast %cst_24 : f32 to vector<8x1024xf32>
    %35 = arith.cmpf ogt, %33, %34 : vector<8x1024xf32>
    %cst_25 = arith.constant 2.000000e-01 : f32
    %36 = vector.broadcast %cst_25 : f32 to vector<8x1024xf32>
    %37 = arith.mulf %36, %33 : vector<8x1024xf32>
    %38 = arith.select %35, %33, %37 : vector<8x1024xi1>, vector<8x1024xf32>
    %39 = arith.truncf %38 : vector<8x1024xf32> to vector<8x1024xbf16>
    %c0_26 = arith.constant 0 : index
    %c0_27 = arith.constant 0 : index
    %40 = vector.load %arg10[%c0_26, %c0_27] : memref<1024x128xbf16, #tpu.memory_space<vmem>>, vector<1024x128xbf16>
    %cst_28 = arith.constant dense<0.000000e+00> : vector<8x128xf32>
    %41 = tpu.matmul %39, %40, %cst_28 {dimension_numbers = #tpu.dot_dimension_numbers<[1], [0], [0], [1], [0, 0, 1, 1], [], []>} : vector<8x1024xbf16>, vector<1024x128xbf16>, vector<8x128xf32> -> vector<8x128xf32>
    %c0_29 = arith.constant 0 : index
    %c0_30 = arith.constant 0 : index
    %42 = vector.load %arg11[%c0_29, %c0_30] : memref<1x128xf32, #tpu.memory_space<vmem>>, vector<1x128xf32>
    %43 = vector.broadcast %42 : vector<1x128xf32> to vector<8x128xf32>
    %44 = arith.addf %41, %43 : vector<8x128xf32>
    %45 = math.tanh %44 : vector<8x128xf32>
    %c0_31 = arith.constant 0 : index
    %c0_32 = arith.constant 0 : index
    %46 = vector.load %arg12[%c0_31, %c0_32] : memref<8x128xf32, #tpu.memory_space<vmem>>, vector<8x128xf32>
    tpu.vector_store %arg12[%c0_31, %c0_32], %45 {strides = array<i32>} : memref<8x128xf32, #tpu.memory_space<vmem>>, vector<8x128xf32>,
    return
  }
  func.func @transform_0(%arg0: i32) -> (i32, i32) {
    %c0_i32 = arith.constant 0 : i32
    %c0_i32_0 = arith.constant 0 : i32
    return %arg0, %c0_i32 : i32, i32
  }
  func.func @transform_1(%arg0: i32) -> (i32, i32) {
    %c0_i32 = arith.constant 0 : i32
    %c0_i32_0 = arith.constant 0 : i32
    return %arg0, %c0_i32 : i32, i32
  }
  func.func @transform_2(%arg0: i32) -> (i32, i32) {
    %c0_i32 = arith.constant 0 : i32
    %c0_i32_0 = arith.constant 0 : i32
    %c0_i32_1 = arith.constant 0 : i32
    return %c0_i32, %c0_i32_0 : i32, i32
  }
  func.func @transform_3(%arg0: i32) -> (i32, i32) {
    %c0_i32 = arith.constant 0 : i32
    %c0_i32_0 = arith.constant 0 : i32
    %c0_i32_1 = arith.constant 0 : i32
    return %c0_i32, %c0_i32_0 : i32, i32
  }
  func.func @transform_4(%arg0: i32) -> (i32, i32) {
    %c0_i32 = arith.constant 0 : i32
    %c0_i32_0 = arith.constant 0 : i32
    %c0_i32_1 = arith.constant 0 : i32
    return %c0_i32, %c0_i32_0 : i32, i32
  }
  func.func @transform_5(%arg0: i32) -> (i32, i32) {
    %c0_i32 = arith.constant 0 : i32
    %c0_i32_0 = arith.constant 0 : i32
    %c0_i32_1 = arith.constant 0 : i32
    return %c0_i32, %c0_i32_0 : i32, i32
  }
  func.func @transform_6(%arg0: i32) -> (i32, i32) {
    %c0_i32 = arith.constant 0 : i32
    %c0_i32_0 = arith.constant 0 : i32
    %c0_i32_1 = arith.constant 0 : i32
    return %c0_i32, %c0_i32_0 : i32, i32
  }
  func.func @transform_7(%arg0: i32) -> (i32, i32) {
    %c0_i32 = arith.constant 0 : i32
    %c0_i32_0 = arith.constant 0 : i32
    %c0_i32_1 = arith.constant 0 : i32
    return %c0_i32, %c0_i32_0 : i32, i32
  }
  func.func @transform_8(%arg0: i32) -> (i32, i32) {
    %c0_i32 = arith.constant 0 : i32
    %c0_i32_0 = arith.constant 0 : i32
    %c0_i32_1 = arith.constant 0 : i32
    return %c0_i32, %c0_i32_0 : i32, i32
  }
  func.func @transform_9(%arg0: i32) -> (i32, i32) {
    %c0_i32 = arith.constant 0 : i32
    %c0_i32_0 = arith.constant 0 : i32
    %c0_i32_1 = arith.constant 0 : i32
    return %c0_i32, %c0_i32_0 : i32, i32
  }
  func.func @transform_10(%arg0: i32) -> (i32, i32) {
    %c0_i32 = arith.constant 0 : i32
    %c0_i32_0 = arith.constant 0 : i32
    %c0_i32_1 = arith.constant 0 : i32
    return %c0_i32, %c0_i32_0 : i32, i32
  }
  func.func @transform_11(%arg0: i32) -> (i32, i32) {
    %c0_i32 = arith.constant 0 : i32
    %c0_i32_0 = arith.constant 0 : i32
    return %arg0, %c0_i32 : i32, i32
  }
}

</mosaic_0001>

<bundles_post_ra>
// kernel: tpu_custom_call.1
= control target key start
LH: loop header
LB: loop body
LE: loop exit
PB: predicated region body
PF: predicated region fallthrough
CT: control target
= control target key end

     0   :  { %16 = vsyncpa [#allocation3], 0  ;;  %s4547_s0 = inlined_call_operand.hbm [shape: f32[8,100], index: 0, kind: input, shape index: {}]   ;;  %s4548_s1 = inlined_call_operand.hbm [shape: f32[8,32], index: 1, kind: input, shape index: {}]   ;;  %s4549_s2 = inlined_call_operand.hbm [shape: bf16[100,256], index: 2, kind: input, shape index: {}]   ;;  %s4550_s3 = inlined_call_operand.hbm [shape: bf16[32,256], index: 3, kind: input, shape index: {}]   ;;  %s4551_s4 = inlined_call_operand.vmem [shape: f32[1,256], index: 4, kind: input, shape index: {}]   ;;  %s4552_s5 = inlined_call_operand.hbm [shape: bf16[256,512], index: 5, kind: input, shape index: {}]   ;;  %s4553_s6 = inlined_call_operand.vmem [shape: f32[1,512], index: 6, kind: input, shape index: {}]   ;;  %s4554_s7 = inlined_call_operand.hbm [shape: bf16[512,1024], index: 7, kind: input, shape index: {}]   ;;  %s4555_s8 = inlined_call_operand.vmem [shape: f32[1,1024], index: 8, kind: input, shape index: {}]   ;;  %s4556_s9 = inlined_call_operand.hbm [shape: bf16[1024,128], index: 9, kind: input, shape index: {}]   ;;  %s4557_s10 = inlined_call_operand.vmem [shape: f32[1,128], index: 10, kind: input, shape index: {}]   ;;  %s4558_s11 = inlined_call_operand.hbm [shape: f32[8,128], index: 11, kind: output, shape index: {}]  }
   0x1   :  { %17 = vsyncpa [#allocation6], 0 }
   0x2   :  { %18 = vsyncpa [#allocation9], 0 }
   0x3   :  { %19 = vsyncpa [#allocation12], 0 }
   0x4   :  { %20 = vsyncpa [#allocation4], 0  ;;  %s4366_s17 = smov [#allocation5]  }
   0x5   :  { %s37_s18 = sshll.u32 %s4366_s17, 4  ;;  %s38_s18 = int_to_ptr.vmem [resolvable:$true] %s37_s18 }
   0x6   :  { %s4204_s19 = scalar_lea.vmem %s38_s18, 128  ;;  %p4209_p1 = scmp.lt.s32.totalorder %s38_s18, %s38_s18 }
   0x7   :  { %p4205_p0 = scmp.ne.s32.totalorder %s38_s18, %s4204_s19  ;;  %p4210_p2 = scmp.lt.s32.totalorder %s4204_s19, %s4204_s19 }
   0x9   :  { %p4211_p3 = por %p4210_p2, %p4209_p1 }
   0xb   :  { %p4212_p4 = pnand %p4211_p3, %p4205_p0 }
   0xd   :  { %4215 = shalt.err (!%p4212_p4)
}
   0xe   :  { %40 = dma.hbm_to_vmem [thread:$0]  %s4548_s1, 128, %s38_s18, [#allocation6]  }
   0xf   :  { %s4367_s22 = smov [#allocation8]   ;;  %s4368_s24 = smov [#allocation11]  }
  0x10   :  { %s58_s23 = sshll.u32 %s4367_s22, 4  ;;  %s86_s25 = sshll.u32 %s4368_s24, 4  ;;  %s59_s23 = int_to_ptr.vmem [resolvable:$true] %s58_s23  ;;  %s87_s25 = int_to_ptr.vmem [resolvable:$true] %s86_s25 }
  0x11   :  { %s4224_s26 = scalar_lea.vmem %s59_s23, 512  ;;  %p4229_p6 = scmp.lt.s32.totalorder %s59_s23, %s59_s23 }
  0x12   :  { %p4225_p5 = scmp.ne.s32.totalorder %s59_s23, %s4224_s26  ;;  %p4230_p7 = scmp.lt.s32.totalorder %s4224_s26, %s4224_s26 }
  0x14   :  { %p4231_p8 = por %p4230_p7, %p4229_p6 }
  0x16   :  { %p4232_p9 = pnand %p4231_p8, %p4225_p5 }
  0x18   :  { %4235 = shalt.err (!%p4232_p9)
}
  0x19   :  { %s4369_s27 = smov 128   ;;  %s4370_s28 = smov 8  }
  0x1a   :  { %64 = dma.hbm_to_vmem [thread:$0]  %s4550_s3, 512, %s59_s23, [#allocation9], %s4369_s27, %s4369_s27, %s4370_s28  }
  0x1b   :  { %s4244_s1 = scalar_lea.vmem %s87_s25, 32768  ;;  %p4249_p11 = scmp.lt.s32.totalorder %s87_s25, %s87_s25 }
  0x1c   :  { %p4245_p10 = scmp.ne.s32.totalorder %s87_s25, %s4244_s1  ;;  %p4250_p12 = scmp.lt.s32.totalorder %s4244_s1, %s4244_s1 }
  0x1e   :  { %p4251_p13 = por %p4250_p12, %p4249_p11 }
  0x20   :  { %p4252_p0 = pnand %p4251_p13, %p4245_p10 }
  0x22   :  { %4255 = shalt.err (!%p4252_p0)
}
  0x23   :  { %s4371_s12 = smov 512   ;;  %s4372_s13 = smov 32  }
  0x24   :  { %92 = dma.hbm_to_vmem [thread:$0]  %s4554_s7, 32768, %s87_s25, [#allocation12], %s4371_s12, %s4371_s12, %s4372_s13  }
  0x25   :  { %s4373_s16 = smov [#allocation2]   ;;  %s4374_s18 = smov [#allocation7]  }
  0x26   :  { %s27_s17 = sshll.u32 %s4373_s16, 4  ;;  %s46_s19 = sshll.u32 %s4374_s18, 4  ;;  %s28_s17 = int_to_ptr.vmem [resolvable:$true] %s27_s17  ;;  %s47_s19 = int_to_ptr.vmem [resolvable:$true] %s46_s19 }
  0x27   :  { %s4264_s3 = scalar_lea.vmem %s28_s17, 128  ;;  %p4269_p2 = scmp.lt.s32.totalorder %s28_s17, %s28_s17 }
  0x28   :  { %p4265_p1 = scmp.ne.s32.totalorder %s28_s17, %s4264_s3  ;;  %p4270_p3 = scmp.lt.s32.totalorder %s4264_s3, %s4264_s3 }
  0x2a   :  { %p4271_p4 = por %p4270_p3, %p4269_p2 }
  0x2c   :  { %p4272_p5 = pnand %p4271_p4, %p4265_p1 }
  0x2e   :  { %4275 = shalt.err (!%p4272_p5)
}
  0x2f   :  { %30 = dma.hbm_to_vmem [thread:$0]  %s4547_s0, 128, %s28_s17, [#allocation3]  }
  0x30   :  { %s4284_s22 = scalar_lea.vmem %s47_s19, 1664  ;;  %p4289_p7 = scmp.lt.s32.totalorder %s47_s19, %s47_s19 }
  0x31   :  { %p4285_p6 = scmp.ne.s32.totalorder %s47_s19, %s4284_s22  ;;  %p4290_p8 = scmp.lt.s32.totalorder %s4284_s22, %s4284_s22 }
  0x33   :  { %p4291_p9 = por %p4290_p8, %p4289_p7 }
  0x35   :  { %p4292_p10 = pnand %p4291_p9, %p4285_p6 }
  0x37   :  { %4295 = shalt.err (!%p4292_p10)
}
  0x38   :  { %52 = dma.hbm_to_vmem [thread:$0]  %s4549_s2, 1664, %s47_s19, [#allocation6], %s4369_s27, %s4369_s27, %s4370_s28  }
  0x39   :  { %s4375_s24 = smov [#allocation10]  }
  0x3a   :  { %s72_s25 = sshll.u32 %s4375_s24, 4  ;;  %s73_s25 = int_to_ptr.vmem [resolvable:$true] %s72_s25 }
  0x3b   :  { %s4304_s26 = scalar_lea.vmem %s73_s25, 8192  ;;  %p4309_p12 = scmp.lt.s32.totalorder %s73_s25, %s73_s25 }
  0x3c   :  { %p4305_p11 = scmp.ne.s32.totalorder %s73_s25, %s4304_s26  ;;  %p4310_p13 = scmp.lt.s32.totalorder %s4304_s26, %s4304_s26 }
  0x3e   :  { %p4311_p0 = por %p4310_p13, %p4309_p12 }
  0x40   :  { %p4312_p1 = pnand %p4311_p0, %p4305_p11 }
  0x42   :  { %4315 = shalt.err (!%p4312_p1)
}
  0x43   :  { %s4376_s0 = smov 256   ;;  %s4377_s29 = smov 16  }
  0x44   :  { %78 = dma.hbm_to_vmem [thread:$0]  %s4552_s5, 8192, %s73_s25, [#allocation9], %s4376_s0, %s4376_s0, %s4377_s29  }
  0x45   :  { %s4378_s12 = smov [#allocation13]  }
  0x46   :  { %s100_s13 = sshll.u32 %s4378_s12, 4  ;;  %s101_s13 = int_to_ptr.vmem [resolvable:$true] %s100_s13 }
  0x47   :  { %s4324_s2 = scalar_lea.vmem %s101_s13, 8192  ;;  %p4329_p3 = scmp.lt.s32.totalorder %s101_s13, %s101_s13 }
  0x48   :  { %p4325_p2 = scmp.ne.s32.totalorder %s101_s13, %s4324_s2  ;;  %p4330_p4 = scmp.lt.s32.totalorder %s4324_s2, %s4324_s2 }
  0x4a   :  { %p4331_p5 = por %p4330_p4, %p4329_p3 }
  0x4c   :  { %p4332_p6 = pnand %p4331_p5, %p4325_p2 }
  0x4e   :  { %4335 = shalt.err (!%p4332_p6)
}
  0x4f   :  { %s4379_s27 = smov 64   ;;  %s4380_s28 = smov 4  }
  0x50   :  { %106 = dma.hbm_to_vmem [thread:$0]  %s4556_s9, 8192, %s101_s13, [#allocation12], %s4379_s27, %s4379_s27, %s4380_s28  }
  0x51   :  { %4356 = dma.done.wait [#allocation3], 128  }
  0x52   :  { %4357 = vsyncadd [#allocation3], 4294967168 }
  0x53   :  { %4358 = dma.done.wait [#allocation6], 1792  }
  0x54   :  { %4359 = vsyncadd [#allocation6], 4294965504 }
  0x55   :  { %4360 = dma.done.wait [#allocation9], 8704  }
  0x56   :  { %4361 = vsyncadd [#allocation9], 4294958592 }
  0x57   :  { %4362 = dma.done.wait [#allocation12], 40960  }
  0x58   :  { %4363 = vsyncadd [#allocation12], 4294926336  ;;  %v4381_v0 = vmov 0   ;;  %v145_v1 = vld [vmem:[#allocation7 + $0x60] sm:$0x33]  ;;  %vm286_vm0 = vcmask 1041408  }
  0x59   :  { %208 = vmatprep.mubr.bf16.mxu0 %v4381_v0  ;;  %325 = vmatprep.mubr.bf16.mxu1 %v4381_v0  ;;  %v3515_v2 = vcombine.high %v145_v1, %v145_v1  ;;  %v3514_v3 = vcombine.low %v145_v1, %v145_v1  ;;  %v4010_v4 = vld [vmem:[#allocation7 + $0x54] ss:$8 sps:$4 sm:$0xff]   ;;  %v4012_v6 = vld [vmem:[#allocation7 + $0x50] ss:$8 sps:$4 sm:$0xff]   ;;  %v4013_v7 = vld [vmem:[#allocation7 + $0x44] ss:$8 sps:$4 sm:$0xff]  }
  0x5a   :  { %v4019_v8 = vld [vmem:[#allocation8 + $0x14] ss:$8 sps:$4 sm:$0xff]   ;;  %v4021_v9 = vld [vmem:[#allocation8 + $0x10] ss:$8 sps:$4 sm:$0xff]   ;;  %v4025_v11 = vld [vmem:[#allocation8 + $0x4] ss:$8 sps:$4 sm:$0xff]  }
  0x5b   :  { %3516 = vmatprep.subr.msk.bf16.mxu1 %vm286_vm0, %v3515_v2  ;;  %v288_v5 = vsel %vm286_vm0, %v3514_v3, 0  ;;  %v4015_v10 = vld [vmem:[#allocation7 + $0x40] ss:$8 sps:$4 sm:$0xff]   ;;  %188 = vmatprep.subr.bf16.mxu0 %v4019_v8  ;;  %v4016_v13 = vld [vmem:[#allocation7 + $0x34] ss:$8 sps:$4 sm:$0xff]   ;;  %vm172_vm1 = vcmask 261120  }
  0x5c   :  { %296 = vmatpush1.bf16.msra.mxu1 %v288_v5  ;;  %189 = vmatpush1.bf16.msra.mxu0 %v4021_v9  ;;  %v4027_v12 = vld [vmem:[#allocation8] ss:$8 sps:$4 sm:$0xff]   ;;  %v146_v14 = vld [vmem:[#allocation5] sm:$0xff]  ;;  %v4022_v19 = vld [vmem:[#allocation7 + $0x24] ss:$8 sps:$4 sm:$0xff]   ;;  %vm282_vm2 = vcmask 818176  }
  0x5d   :  { %297 = vmatprep.subr.bf16.mxu1 %v4010_v4  ;;  %190 = vmatprep.subr.bf16.mxu0 %v4025_v11  ;;  %v4018_v15 = vld [vmem:[#allocation7 + $0x30] ss:$8 sps:$4 sm:$0xff]   ;;  %v147_v16 = vpack.c.bf16 %v146_v14, %v146_v14  ;;  %v4036_v18 = vld [vmem:[#allocation10 + $0xe4] ss:$16 sps:$4 sm:$0xff]   ;;  %v4024_v21 = vld [vmem:[#allocation7 + $0x20] ss:$8 sps:$4 sm:$0xff]  }
  0x5e   :  { %v4034_v17 = vld [vmem:[#allocation10 + $0xe0] ss:$16 sps:$4 sm:$0xff]   ;;  %v4042_v20 = vld [vmem:[#allocation10 + $0xc4] ss:$16 sps:$4 sm:$0xff]   ;;  %v131_v30 = vld [vmem:[#allocation2] sm:$0xff] }
  0x5f   :  { %v4040_v22 = vld [vmem:[#allocation10 + $0xc0] ss:$16 sps:$4 sm:$0xff]   ;;  %v4028_v23 = vld [vmem:[#allocation7 + $0x14] ss:$8 sps:$4 sm:$0xff]   ;;  %v4031_v26 = vld [vmem:[#allocation7 + $0x4] ss:$8 sps:$4 sm:$0xff]   ;;  %v132_v34 = vpack.c.bf16 %v131_v30, %v131_v30 }
  0x60   :  { %298 = vmatpush1.bf16.msra.mxu1 %v4012_v6  ;;  %191 = vmatpush1.bf16.msra.mxu0 %v4027_v12  ;;  %v4048_v24 = vld [vmem:[#allocation10 + $0xa4] ss:$16 sps:$4 sm:$0xff]   ;;  %v4030_v25 = vld [vmem:[#allocation7 + $0x10] ss:$8 sps:$4 sm:$0xff]   ;;  %v4033_v29 = vld [vmem:[#allocation7] ss:$8 sps:$4 sm:$0xff]  }
  0x61   :  { %299 = vmatprep.subr.bf16.mxu1 %v4013_v7  ;;  %762 = vmatprep.subr.bf16.mxu0 %v4036_v18  ;;  %v4046_v27 = vld [vmem:[#allocation10 + $0xa0] ss:$16 sps:$4 sm:$0xff]   ;;  %v4054_v28 = vld [vmem:[#allocation10 + $0x84] ss:$16 sps:$4 sm:$0xff]   ;;  %v4039_v31 = vld [vmem:[#allocation10 + $0xec] ss:$16 sps:$4 sm:$0xff]  }
  0x62   :  { %v4052_v32 = vld [vmem:[#allocation10 + $0x80] ss:$16 sps:$4 sm:$0xff]   ;;  %v4060_v33 = vld [vmem:[#allocation10 + $0x64] ss:$16 sps:$4 sm:$0xff]   ;;  %v4037_v35 = vld [vmem:[#allocation10 + $0xe8] ss:$16 sps:$4 sm:$0xff]  }
  0x63   :  { %3501 = vmatmul.mubr.msk.bf16.vlgmr.msra.gmra.mxu0 %vm172_vm1, %v147_v16  ;;  %v4045_v36 = vld [vmem:[#allocation10 + $0xcc] ss:$16 sps:$4 sm:$0xff]   ;;  %v4058_v37 = vld [vmem:[#allocation10 + $0x60] ss:$16 sps:$4 sm:$0xff]   ;;  %v4066_v38 = vld [vmem:[#allocation10 + $0x44] ss:$16 sps:$4 sm:$0xff]  }
  0x64   :  { %300 = vmatpush1.bf16.msra.mxu1 %v4015_v10  ;;  %763 = vmatpush1.bf16.msra.mxu0 %v4034_v17  ;;  %v4043_v39 = vld [vmem:[#allocation10 + $0xc8] ss:$16 sps:$4 sm:$0xff]   ;;  %v4051_v40 = vld [vmem:[#allocation10 + $0xac] ss:$16 sps:$4 sm:$0xff]   ;;  %v4064_v41 = vld [vmem:[#allocation10 + $0x40] ss:$16 sps:$4 sm:$0xff]  }
  0x65   :  { %301 = vmatprep.subr.bf16.mxu1 %v4016_v13  ;;  %764 = vmatprep.subr.bf16.mxu0 %v4042_v20  ;;  %v4072_v42 = vld [vmem:[#allocation10 + $0x24] ss:$16 sps:$4 sm:$0xff]   ;;  %v4049_v43 = vld [vmem:[#allocation10 + $0xa8] ss:$16 sps:$4 sm:$0xff]   ;;  %v4057_v44 = vld [vmem:[#allocation10 + $0x8c] ss:$16 sps:$4 sm:$0xff]  }
  0x66   :  { %v4070_v45 = vld [vmem:[#allocation10 + $0x20] ss:$16 sps:$4 sm:$0xff]   ;;  %v4078_v46 = vld [vmem:[#allocation10 + $0x4] ss:$16 sps:$4 sm:$0xff]   ;;  %v4055_v47 = vld [vmem:[#allocation10 + $0x88] ss:$16 sps:$4 sm:$0xff]  }
  0x67   :  { %v4063_v48 = vld [vmem:[#allocation10 + $0x6c] ss:$16 sps:$4 sm:$0xff]   ;;  %v4076_v49 = vld [vmem:[#allocation10] ss:$16 sps:$4 sm:$0xff]   ;;  %v4084_v50 = vld [vmem:[#allocation10 + $0x1e4] ss:$16 sps:$4 sm:$0xff]  }
  0x68   :  { %302 = vmatpush1.bf16.msra.mxu1 %v4018_v15  ;;  %765 = vmatpush1.bf16.msra.mxu0 %v4040_v22  ;;  %v4061_v51 = vld [vmem:[#allocation10 + $0x68] ss:$16 sps:$4 sm:$0xff]   ;;  %v4069_v52 = vld [vmem:[#allocation10 + $0x4c] ss:$16 sps:$4 sm:$0xff]   ;;  %v4082_v53 = vld [vmem:[#allocation10 + $0x1e0] ss:$16 sps:$4 sm:$0xff]  }
  0x69   :  { %303 = vmatprep.subr.bf16.mxu1 %v4022_v19  ;;  %766 = vmatprep.subr.bf16.mxu0 %v4048_v24  ;;  %v4090_v54 = vld [vmem:[#allocation10 + $0x1c4] ss:$16 sps:$4 sm:$0xff]   ;;  %v4067_v55 = vld [vmem:[#allocation10 + $0x48] ss:$16 sps:$4 sm:$0xff]   ;;  %v4088_v56 = vld [vmem:[#allocation10 + $0x1c0] ss:$16 sps:$4 sm:$0xff]  }
  0x6a   :  { %v4075_v57 = vld [vmem:[#allocation10 + $0x2c] ss:$16 sps:$4 sm:$0xff]   ;;  %v4096_v58 = vld [vmem:[#allocation10 + $0x1a4] ss:$16 sps:$4 sm:$0xff]   ;;  %v4073_v59 = vld [vmem:[#allocation10 + $0x28] ss:$16 sps:$4 sm:$0xff]  }
  0x6b   :  { %v4094_v60 = vld [vmem:[#allocation10 + $0x1a0] ss:$16 sps:$4 sm:$0xff]   ;;  %v4081_v61 = vld [vmem:[#allocation10 + $0xc] ss:$16 sps:$4 sm:$0xff]   ;;  %v4102_v62 = vld [vmem:[#allocation10 + $0x184] ss:$16 sps:$4 sm:$0xff]  }
  0x6c   :  { %304 = vmatpush1.bf16.msra.mxu1 %v4024_v21  ;;  %767 = vmatpush1.bf16.msra.mxu0 %v4046_v27  ;;  %v4079_v63 = vld [vmem:[#allocation10 + $0x8] ss:$16 sps:$4 sm:$0xff]   ;;  %v4100_v0 = vld [vmem:[#allocation10 + $0x180] ss:$16 sps:$4 sm:$0xff]   ;;  %v4087_v1 = vld [vmem:[#allocation10 + $0x1ec] ss:$16 sps:$4 sm:$0xff]  }
  0x6d   :  { %305 = vmatprep.subr.bf16.mxu1 %v4028_v23  ;;  %768 = vmatprep.subr.bf16.mxu0 %v4054_v28  ;;  %v4085_v2 = vld [vmem:[#allocation10 + $0x1e8] ss:$16 sps:$4 sm:$0xff]   ;;  %v4093_v3 = vld [vmem:[#allocation10 + $0x1cc] ss:$16 sps:$4 sm:$0xff]   ;;  %v4106_v9 = vld [vmem:[#allocation10 + $0x160] ss:$16 sps:$4 sm:$0xff]  }
  0x6e   :  { %v4091_v4 = vld [vmem:[#allocation10 + $0x1c8] ss:$16 sps:$4 sm:$0xff]   ;;  %v4099_v5 = vld [vmem:[#allocation10 + $0x1ac] ss:$16 sps:$4 sm:$0xff]   ;;  %v4108_v10 = vld [vmem:[#allocation10 + $0x164] ss:$16 sps:$4 sm:$0xff]  }
  0x6f   :  { %v4097_v6 = vld [vmem:[#allocation10 + $0x1a8] ss:$16 sps:$4 sm:$0xff]   ;;  %v4105_v7 = vld [vmem:[#allocation10 + $0x18c] ss:$16 sps:$4 sm:$0xff]   ;;  %v4114_v13 = vld [vmem:[#allocation10 + $0x144] ss:$16 sps:$4 sm:$0xff]  }
  0x70   :  { %306 = vmatpush1.bf16.msra.mxu1 %v4030_v25  ;;  %769 = vmatpush1.bf16.msra.mxu0 %v4052_v32  ;;  %v4103_v8 = vld [vmem:[#allocation10 + $0x188] ss:$16 sps:$4 sm:$0xff]   ;;  %v4111_v12 = vld [vmem:[#allocation10 + $0x16c] ss:$16 sps:$4 sm:$0xff]   ;;  %v4112_v15 = vld [vmem:[#allocation10 + $0x140] ss:$16 sps:$4 sm:$0xff]  }
  0x71   :  { %307 = vmatprep.subr.bf16.mxu1 %v4031_v26  ;;  %770 = vmatprep.subr.bf16.mxu0 %v4060_v33  ;;  %v4109_v11 = vld [vmem:[#allocation10 + $0x168] ss:$16 sps:$4 sm:$0xff]   ;;  %v4117_v14 = vld [vmem:[#allocation10 + $0x14c] ss:$16 sps:$4 sm:$0xff]   ;;  %v4120_v17 = vld [vmem:[#allocation10 + $0x124] ss:$16 sps:$4 sm:$0xff]  }
  0x72   :  { %v4115_v16 = vld [vmem:[#allocation10 + $0x148] ss:$16 sps:$4 sm:$0xff]   ;;  %v4123_v18 = vld [vmem:[#allocation10 + $0x12c] ss:$16 sps:$4 sm:$0xff]   ;;  %v4118_v19 = vld [vmem:[#allocation10 + $0x120] ss:$16 sps:$4 sm:$0xff]  }
  0x73   :  { %v4121_v20 = vld [vmem:[#allocation10 + $0x128] ss:$16 sps:$4 sm:$0xff]   ;;  %v4126_v21 = vld [vmem:[#allocation10 + $0x104] ss:$16 sps:$4 sm:$0xff]   ;;  %v4129_v22 = vld [vmem:[#allocation10 + $0x10c] ss:$16 sps:$4 sm:$0xff]  }
  0x74   :  { %308 = vmatpush1.bf16.msra.mxu1 %v4033_v29  ;;  %771 = vmatpush1.bf16.msra.mxu0 %v4058_v37  ;;  %v4124_v23 = vld [vmem:[#allocation10 + $0x100] ss:$16 sps:$4 sm:$0xff]   ;;  %v4127_v24 = vld [vmem:[#allocation10 + $0x108] ss:$16 sps:$4 sm:$0xff]  }
  0x75   :  { %803 = vmatprep.subr.bf16.mxu1 %v4039_v31  ;;  %772 = vmatprep.subr.bf16.mxu0 %v4066_v38  ;;  %v916_v25 = vld [vmem:[#allocation11 + $0x1c0] sm:$0xff] }
  0x76   :  { %v920_v26 = vld [vmem:[#allocation11 + $0x1e0] sm:$0xff] }
  0x77   :  { %3517 = vmatmul.mubr.msk.bf16.vlgmr.msra.gmra.mxu1 %vm282_vm2, %v132_v34  ;;  %v1044_v27 = vld [vmem:[#allocation11 + $0x5c0] sm:$0xff]  ;;  %v3638_v28 = vcombine.low %v916_v25, %v920_v26  ;;  %v3639_v29 = vcombine.high %v916_v25, %v920_v26 }
  0x78   :  { %804 = vmatpush1.bf16.msra.mxu1 %v4037_v35  ;;  %773 = vmatpush1.bf16.msra.mxu0 %v4064_v41  ;;  %v1048_v30 = vld [vmem:[#allocation11 + $0x5e0] sm:$0xff]  ;;  %v336_v35 = vlaneseq }
  0x79   :  { %805 = vmatprep.subr.bf16.mxu1 %v4045_v36  ;;  %774 = vmatprep.subr.bf16.mxu0 %v4072_v42  ;;  %v3766_v31 = vcombine.low %v1044_v27, %v1048_v30  ;;  %v3767_v32 = vcombine.high %v1044_v27, %v1048_v30  ;;  %v880_v25 = vld [vmem:[#allocation11 + $0xa0] sm:$0xff] }
  0x7a   :  { %v4470_v38 = vshrl.u32 %v336_v35, 7  ;;  %v1004_v26 = vld [vmem:[#allocation11 + $0x480] sm:$0xff] }
  0x7b   :  { %v1008_v27 = vld [vmem:[#allocation11 + $0x4a0] sm:$0xff] }
  0x7c   :  { %806 = vmatpush1.bf16.msra.mxu1 %v4043_v39  ;;  %775 = vmatpush1.bf16.msra.mxu0 %v4070_v45  ;;  %v4473_v39 = vsub.s32 0, %v4470_v38  ;;  %v4479_v41 = vsub.s32 1, %v4470_v38  ;;  %v1000_v35 = vld [vmem:[#allocation11 + $0x460] sm:$0xff] }
  0x7d   :  { %807 = vmatprep.subr.bf16.mxu1 %v4051_v40  ;;  %776 = vmatprep.subr.bf16.mxu0 %v4078_v46  ;;  %v334_v40 = vld [vmem:[%s4551_s4] sm:$0x3] }
  0x7e   :  { %v339_v42 = vrot.slane %v334_v40, %v4473_v39  ;;  %v343_v45 = vrot.slane %v334_v40, %v4479_v41 }
  0x80   :  { %808 = vmatpush1.bf16.msra.mxu1 %v4049_v43  ;;  %777 = vmatpush1.bf16.msra.mxu0 %v4076_v49 }
  0x81   :  { %809 = vmatprep.subr.bf16.mxu1 %v4057_v44  ;;  %778 = vmatprep.subr.bf16.mxu0 %v4084_v50 }
  0x84   :  { %810 = vmatpush1.bf16.msra.mxu1 %v4055_v47  ;;  %779 = vmatpush2.bf16.msra.mxu0 %v4082_v53 }
  0x85   :  { %811 = vmatprep.subr.bf16.mxu1 %v4063_v48  ;;  %780 = vmatprep.subr.bf16.mxu0 %v4090_v54  ;;  %v908_v54 = vld [vmem:[#allocation11 + $0x180] sm:$0xff] }
  0x88   :  { %812 = vmatpush1.bf16.msra.mxu1 %v4061_v51  ;;  %781 = vmatpush2.bf16.msra.mxu0 %v4088_v56  ;;  %v912_v56 = vld [vmem:[#allocation11 + $0x1a0] sm:$0xff] }
  0x89   :  { %813 = vmatprep.subr.bf16.mxu1 %v4069_v52  ;;  %782 = vmatprep.subr.bf16.mxu0 %v4096_v58  ;;  %v1040_v58 = vld [vmem:[#allocation11 + $0x5a0] sm:$0xff] }
  0x8c   :  { %814 = vmatpush1.bf16.msra.mxu1 %v4067_v55  ;;  %783 = vmatpush2.bf16.msra.mxu0 %v4094_v60 }
  0x8d   :  { %815 = vmatprep.subr.bf16.mxu1 %v4075_v57  ;;  %784 = vmatprep.subr.bf16.mxu0 %v4102_v62  ;;  %v1036_v57 = vld [vmem:[#allocation11 + $0x580] sm:$0xff]  ;;  %v3631_v62 = vcombine.high %v908_v54, %v912_v56 }
  0x90   :  { %816 = vmatpush1.bf16.msra.mxu1 %v4073_v59  ;;  %785 = vmatpush2.bf16.msra.mxu0 %v4100_v0  ;;  %v900_v0 = vld [vmem:[#allocation11 + $0x140] sm:$0xff] }
  0x91   :  { %817 = vmatprep.subr.bf16.mxu1 %v4081_v61  ;;  %786 = vmatprep.subr.bf16.mxu0 %v4108_v10  ;;  %v1020_v10 = vld [vmem:[#allocation11 + $0x500] sm:$0xff] }
  0x94   :  { %818 = vmatpush1.bf16.msra.mxu1 %v4079_v63  ;;  %787 = vmatpush2.bf16.msra.mxu0 %v4106_v9  ;;  %v3759_v63 = vcombine.high %v1036_v57, %v1040_v58  ;;  %v896_v9 = vld [vmem:[#allocation11 + $0x120] sm:$0xff] }
  0x95   :  { %819 = vmatprep.subr.bf16.mxu1 %v4087_v1  ;;  %788 = vmatprep.subr.bf16.mxu0 %v4114_v13  ;;  %v904_v1 = vld [vmem:[#allocation11 + $0x160] sm:$0xff] }
  0x98   :  { %820 = vmatpush2.bf16.msra.mxu1 %v4085_v2  ;;  %789 = vmatpush2.bf16.msra.mxu0 %v4112_v15  ;;  %v1028_v2 = vld [vmem:[#allocation11 + $0x540] sm:$0xff] }
  0x99   :  { %821 = vmatprep.subr.bf16.mxu1 %v4093_v3  ;;  %790 = vmatprep.subr.bf16.mxu0 %v4120_v17  ;;  %v1032_v3 = vld [vmem:[#allocation11 + $0x560] sm:$0xff] }
  0x9a   :  { %v3750_v13 = vcombine.low %v1028_v2, %v1032_v3  ;;  %v888_v17 = vld [vmem:[#allocation11 + $0xe0] sm:$0xff] }
  0x9c   :  { %822 = vmatpush2.bf16.msra.mxu1 %v4091_v4  ;;  %791 = vmatpush2.bf16.msra.mxu0 %v4118_v19  ;;  %v3630_v4 = vcombine.low %v908_v54, %v912_v56  ;;  %v1016_v19 = vld [vmem:[#allocation11 + $0x4e0] sm:$0xff] }
  0x9d   :  { %823 = vmatprep.subr.bf16.mxu1 %v4099_v5  ;;  %792 = vmatprep.subr.bf16.mxu0 %v4126_v21  ;;  %v3758_v5 = vcombine.low %v1036_v57, %v1040_v58  ;;  %v1112_v54 = vld [vmem:[#allocation11 + $0x7e0] sm:$0xff] }
  0xa0   :  { %824 = vmatpush2.bf16.msra.mxu1 %v4097_v6  ;;  %793 = vmatpush2.bf16.msra.mxu0 %v4124_v23  ;;  %v3623_v6 = vcombine.high %v900_v0, %v904_v1 }
  0xa1   :  { %825 = vmatprep.subr.bf16.mxu1 %v4105_v7  ;;  %2438 = vmatprep.subr.bf16.mxu0 %v3639_v29  ;;  %v3751_v7 = vcombine.high %v1028_v2, %v1032_v3  ;;  %v964_v3 = vld [vmem:[#allocation11 + $0x340] sm:$0xff] }
  0xa4   :  { %826 = vmatpush2.bf16.msra.mxu1 %v4103_v8  ;;  %v892_v8 = vld [vmem:[#allocation11 + $0x100] sm:$0xff] }
  0xa5   :  { %827 = vmatprep.subr.bf16.mxu1 %v4111_v12  ;;  %v3622_v12 = vcombine.low %v900_v0, %v904_v1 }
  0xa8   :  { %828 = vmatpush2.bf16.msra.mxu1 %v4109_v11  ;;  %v1024_v11 = vld [vmem:[#allocation11 + $0x520] sm:$0xff] }
  0xa9   :  { %829 = vmatprep.subr.bf16.mxu1 %v4117_v14  ;;  %v3615_v14 = vcombine.high %v892_v8, %v896_v9  ;;  %v3743_v15 = vcombine.high %v1020_v10, %v1024_v11  ;;  %v3742_v21 = vcombine.low %v1020_v10, %v1024_v11  ;;  %v956_v11 = vld [vmem:[#allocation11 + $0x300] sm:$0xff] }
  0xac   :  { %830 = vmatpush2.bf16.msra.mxu1 %v4115_v16  ;;  %v884_v16 = vld [vmem:[#allocation11 + $0xc0] sm:$0xff] }
  0xad   :  { %831 = vmatprep.subr.bf16.mxu1 %v4123_v18  ;;  %v1012_v18 = vld [vmem:[#allocation11 + $0x4c0] sm:$0xff] }
  0xae   :  { %v3735_v23 = vcombine.high %v1012_v18, %v1016_v19  ;;  %v3734_v29 = vcombine.low %v1012_v18, %v1016_v19  ;;  %v948_v19 = vld [vmem:[#allocation11 + $0x2c0] sm:$0xff] }
  0xb0   :  { %832 = vmatpush2.bf16.msra.mxu1 %v4121_v20  ;;  %v3614_v20 = vcombine.low %v892_v8, %v896_v9 }
  0xb1   :  { %833 = vmatprep.subr.bf16.mxu1 %v4129_v22  ;;  %v3607_v22 = vcombine.high %v884_v16, %v888_v17 }
  0xb4   :  { %834 = vmatpush2.bf16.msra.mxu1 %v4127_v24  ;;  %v876_v24 = vld [vmem:[#allocation11 + $0x80] sm:$0xff] }
  0xb5   :  { %2479 = vmatprep.subr.bf16.mxu1 %v3767_v32  ;;  %v3599_v30 = vcombine.high %v876_v24, %v880_v25  ;;  %v868_v32 = vld [vmem:[#allocation11 + $0x40] sm:$0xff] }
 0x123   :  { %v210_v33 = vpop.f32.mrf.mxu0 }
 0x125   :  { %v212_v34 = vpop.f32.mrf.mxu0 }
 0x127   :  { %v214_v36 = vpop.f32.mrf.mxu0 }
 0x128   :  { %v3598_v36 = vcombine.low %v876_v24, %v880_v25 }
 0x129   :  { %v215_v37 = vpop.f32.mrf.mxu0 }
 0x12a   :  { %v3726_v37 = vcombine.low %v1004_v26, %v1008_v27 }
 0x137   :  { %v327_v43 = vpop.f32.mrf.mxu1 }
 0x138   :  { %v328_v44 = vadd.f32 %v327_v43, %v210_v33  ;;  %v872_v33 = vld [vmem:[#allocation11 + $0x60] sm:$0xff] }
 0x139   :  { %v329_v46 = vpop.f32.mrf.mxu1  ;;  %v3591_v40 = vcombine.high %v868_v32, %v872_v33  ;;  %v860_v43 = vld [vmem:[#allocation11] sm:$0xff] }
 0x13a   :  { %v346_v47 = vadd.f32 %v339_v42, %v328_v44  ;;  %v330_v48 = vadd.f32 %v329_v46, %v212_v34  ;;  %v996_v34 = vld [vmem:[#allocation11 + $0x440] sm:$0xff] }
 0x13b   :  { %v331_v49 = vpop.f32.mrf.mxu1  ;;  %v3719_v42 = vcombine.high %v996_v34, %v1000_v35  ;;  %v864_v44 = vld [vmem:[#allocation11 + $0x20] sm:$0xff] }
 0x13c   :  { %vm348_vm3 = vcmp.gt.f32.partialorder %v346_v47, 0.0  ;;  %v350_v50 = vmul.f32 0.2, %v346_v47  ;;  %v347_v51 = vadd.f32 %v343_v45, %v330_v48  ;;  %v988_v45 = vld [vmem:[#allocation11 + $0x400] sm:$0xff]  ;;  %v3718_v48 = vcombine.low %v996_v34, %v1000_v35 }
 0x13d   :  { %v332_v52 = vpop.f32.mrf.mxu1  ;;  %v992_v46 = vld [vmem:[#allocation11 + $0x420] sm:$0xff]  ;;  %v3583_v49 = vcombine.high %v860_v43, %v864_v44 }
 0x13e   :  { %v351_v53 = vmul.f32 0.2, %v347_v51  ;;  %vm349_vm4 = vcmp.gt.f32.partialorder %v347_v51, 0.0  ;;  %v352_v55 = vsel %vm348_vm3, %v346_v47, %v350_v50  ;;  %v3590_v47 = vcombine.low %v868_v32, %v872_v33  ;;  %v984_v52 = vld [vmem:[#allocation11 + $0x3e0] sm:$0xff] }
 0x13f   :  { %v354_v61 = vpack.c.bf16 %v352_v55, %v352_v55  ;;  %v3711_v50 = vcombine.high %v988_v45, %v992_v46  ;;  %v3582_v55 = vcombine.low %v860_v43, %v864_v44  ;;  %v3710_v56 = vcombine.low %v988_v45, %v992_v46  ;;  %v1064_v44 = vld [vmem:[#allocation11 + $0x660] sm:$0xff] }
 0x140   :  { %v353_v59 = vsel %vm349_vm4, %v347_v51, %v351_v53  ;;  %v980_v51 = vld [vmem:[#allocation11 + $0x3c0] sm:$0xff] }
 0x141   :  { %v355_v60 = vpack.c.bf16 %v353_v59, %v353_v59  ;;  %v1108_v53 = vld [vmem:[#allocation11 + $0x7c0] sm:$0xff]  ;;  %v3703_v57 = vcombine.high %v980_v51, %v984_v52 }
 0x142   :  { %v3831_v58 = vcombine.high %v1108_v53, %v1112_v54  ;;  %v972_v59 = vld [vmem:[#allocation11 + $0x380] sm:$0xff]  ;;  %v3830_v0 = vcombine.low %v1108_v53, %v1112_v54 }
 0x143   :  { %794 = vmatprep.mubr.bf16.mxu0 %v355_v60  ;;  %835 = vmatprep.mubr.bf16.mxu1 %v355_v60  ;;  %v976_v60 = vld [vmem:[#allocation11 + $0x3a0] sm:$0xff] }
 0x144   :  { %795 = vmatmul.mubr.bf16.vlgmr.msra.gmra.mxu0 %v354_v61  ;;  %836 = vmatmul.mubr.bf16.vlgmr.msra.gmra.mxu1 %v354_v61  ;;  %v1100_v61 = vld [vmem:[#allocation11 + $0x780] sm:$0xff]  ;;  %v3695_v1 = vcombine.high %v972_v59, %v976_v60 }
 0x145   :  { %2439 = vmatpush1.bf16.msra.mxu0 %v3638_v28  ;;  %2480 = vmatpush1.bf16.msra.mxu1 %v3766_v31  ;;  %v3606_v28 = vcombine.low %v884_v16, %v888_v17  ;;  %v3727_v31 = vcombine.high %v1004_v26, %v1008_v27  ;;  %v940_v27 = vld [vmem:[#allocation11 + $0x280] sm:$0xff] }
 0x146   :  { %2440 = vmatprep.subr.bf16.mxu0 %v3631_v62  ;;  %2481 = vmatprep.subr.bf16.mxu1 %v3759_v63  ;;  %v1104_v62 = vld [vmem:[#allocation11 + $0x7a0] sm:$0xff]  ;;  %v3702_v63 = vcombine.low %v980_v51, %v984_v52 }
 0x147   :  { %v3823_v2 = vcombine.high %v1100_v61, %v1104_v62  ;;  %v3822_v8 = vcombine.low %v1100_v61, %v1104_v62  ;;  %v1056_v52 = vld [vmem:[#allocation11 + $0x620] sm:$0xff] }
 0x149   :  { %2441 = vmatpush1.bf16.msra.mxu0 %v3630_v4  ;;  %2482 = vmatpush1.bf16.msra.mxu1 %v3758_v5  ;;  %v968_v4 = vld [vmem:[#allocation11 + $0x360] sm:$0xff] }
 0x14a   :  { %2442 = vmatprep.subr.bf16.mxu0 %v3623_v6  ;;  %2483 = vmatprep.subr.bf16.mxu1 %v3751_v7  ;;  %v1092_v5 = vld [vmem:[#allocation11 + $0x740] sm:$0xff]  ;;  %v3694_v7 = vcombine.low %v972_v59, %v976_v60  ;;  %v3687_v9 = vcombine.high %v964_v3, %v968_v4  ;;  %v1049_v60 = vld [vmem:[#allocation11 + $0x5e8] sm:$0xff] }
 0x14b   :  { %v1096_v6 = vld [vmem:[#allocation11 + $0x760] sm:$0xff] }
 0x14c   :  { %v3815_v10 = vcombine.high %v1092_v5, %v1096_v6  ;;  %v3814_v16 = vcombine.low %v1092_v5, %v1096_v6 }
 0x14d   :  { %2443 = vmatpush1.bf16.msra.mxu0 %v3622_v12  ;;  %2484 = vmatpush1.bf16.msra.mxu1 %v3750_v13  ;;  %v960_v12 = vld [vmem:[#allocation11 + $0x320] sm:$0xff] }
 0x14e   :  { %2444 = vmatprep.subr.bf16.mxu0 %v3615_v14  ;;  %2485 = vmatprep.subr.bf16.mxu1 %v3743_v15  ;;  %v1084_v13 = vld [vmem:[#allocation11 + $0x700] sm:$0xff]  ;;  %v3686_v15 = vcombine.low %v964_v3, %v968_v4  ;;  %v3679_v17 = vcombine.high %v956_v11, %v960_v12 }
 0x14f   :  { %v1088_v14 = vld [vmem:[#allocation11 + $0x720] sm:$0xff] }
 0x150   :  { %v3807_v18 = vcombine.high %v1084_v13, %v1088_v14  ;;  %v3806_v24 = vcombine.low %v1084_v13, %v1088_v14 }
 0x151   :  { %2445 = vmatpush1.bf16.msra.mxu0 %v3614_v20  ;;  %2486 = vmatpush1.bf16.msra.mxu1 %v3742_v21  ;;  %v952_v20 = vld [vmem:[#allocation11 + $0x2e0] sm:$0xff] }
 0x152   :  { %2446 = vmatprep.subr.bf16.mxu0 %v3607_v22  ;;  %2487 = vmatprep.subr.bf16.mxu1 %v3735_v23  ;;  %v1076_v21 = vld [vmem:[#allocation11 + $0x6c0] sm:$0xff]  ;;  %v3678_v23 = vcombine.low %v956_v11, %v960_v12  ;;  %v3671_v25 = vcombine.high %v948_v19, %v952_v20 }
 0x153   :  { %v1080_v22 = vld [vmem:[#allocation11 + $0x6e0] sm:$0xff] }
 0x154   :  { %v3799_v26 = vcombine.high %v1076_v21, %v1080_v22  ;;  %v3798_v32 = vcombine.low %v1076_v21, %v1080_v22 }
 0x155   :  { %2447 = vmatpush1.bf16.msra.mxu0 %v3606_v28  ;;  %2488 = vmatpush1.bf16.msra.mxu1 %v3734_v29  ;;  %v944_v28 = vld [vmem:[#allocation11 + $0x2a0] sm:$0xff] }
 0x156   :  { %2448 = vmatprep.subr.bf16.mxu0 %v3599_v30  ;;  %2489 = vmatprep.subr.bf16.mxu1 %v3727_v31  ;;  %v1068_v29 = vld [vmem:[#allocation11 + $0x680] sm:$0xff]  ;;  %v3670_v31 = vcombine.low %v948_v19, %v952_v20  ;;  %v3663_v33 = vcombine.high %v940_v27, %v944_v28  ;;  %v3662_v35 = vcombine.low %v940_v27, %v944_v28  ;;  %v913_v27 = vld [vmem:[#allocation11 + $0x1a8] sm:$0xff] }
 0x157   :  { %v1072_v30 = vld [vmem:[#allocation11 + $0x6a0] sm:$0xff] }
 0x158   :  { %v3791_v34 = vcombine.high %v1068_v29, %v1072_v30 }
 0x159   :  { %2449 = vmatpush1.bf16.msra.mxu0 %v3598_v36  ;;  %2490 = vmatpush1.bf16.msra.mxu1 %v3726_v37  ;;  %v3790_v36 = vcombine.low %v1068_v29, %v1072_v30  ;;  %v932_v37 = vld [vmem:[#allocation11 + $0x240] sm:$0xff]  ;;  %v1037_v30 = vld [vmem:[#allocation11 + $0x588] sm:$0xff] }
 0x15a   :  { %2450 = vmatprep.subr.bf16.mxu0 %v3591_v40  ;;  %2491 = vmatprep.subr.bf16.mxu1 %v3719_v42  ;;  %v936_v40 = vld [vmem:[#allocation11 + $0x260] sm:$0xff] }
 0x15b   :  { %v1060_v42 = vld [vmem:[#allocation11 + $0x640] sm:$0xff]  ;;  %v3655_v43 = vcombine.high %v932_v37, %v936_v40  ;;  %v3654_v45 = vcombine.low %v932_v37, %v936_v40  ;;  %v905_v37 = vld [vmem:[#allocation11 + $0x168] sm:$0xff] }
 0x15c   :  { %v3782_v46 = vcombine.low %v1060_v42, %v1064_v44 }
 0x15d   :  { %2451 = vmatpush1.bf16.msra.mxu0 %v3590_v47  ;;  %2492 = vmatpush1.bf16.msra.mxu1 %v3718_v48  ;;  %v3783_v47 = vcombine.high %v1060_v42, %v1064_v44  ;;  %v924_v48 = vld [vmem:[#allocation11 + $0x200] sm:$0xff]  ;;  %v1029_v42 = vld [vmem:[#allocation11 + $0x548] sm:$0xff] }
 0x15e   :  { %2452 = vmatprep.subr.bf16.mxu0 %v3583_v49  ;;  %2493 = vmatprep.subr.bf16.mxu1 %v3711_v50  ;;  %v928_v49 = vld [vmem:[#allocation11 + $0x220] sm:$0xff] }
 0x15f   :  { %v1052_v50 = vld [vmem:[#allocation11 + $0x600] sm:$0xff]  ;;  %v3647_v51 = vcombine.high %v924_v48, %v928_v49  ;;  %v3646_v53 = vcombine.low %v924_v48, %v928_v49  ;;  %v893_v48 = vld [vmem:[#allocation11 + $0x108] sm:$0xff] }
 0x160   :  { %v3774_v54 = vcombine.low %v1052_v50, %v1056_v52  ;;  %v897_v49 = vld [vmem:[#allocation11 + $0x128] sm:$0xff] }
 0x161   :  { %2453 = vmatpush1.bf16.msra.mxu0 %v3582_v55  ;;  %2494 = vmatpush1.bf16.msra.mxu1 %v3710_v56  ;;  %v3775_v55 = vcombine.high %v1052_v50, %v1056_v52  ;;  %v917_v56 = vld [vmem:[#allocation11 + $0x1c8] sm:$0xff] }
 0x162   :  { %2454 = vmatprep.subr.bf16.mxu0 %v3703_v57  ;;  %2495 = vmatprep.subr.bf16.mxu1 %v3831_v58  ;;  %v921_v57 = vld [vmem:[#allocation11 + $0x1e8] sm:$0xff] }
 0x163   :  { %v1045_v58 = vld [vmem:[#allocation11 + $0x5c8] sm:$0xff]  ;;  %v3641_v59 = vcombine.high %v917_v56, %v921_v57  ;;  %v3640_v61 = vcombine.low %v917_v56, %v921_v57 }
 0x164   :  { %v3768_v62 = vcombine.low %v1045_v58, %v1049_v60  ;;  %v1021_v50 = vld [vmem:[#allocation11 + $0x508] sm:$0xff] }
 0x165   :  { %2455 = vmatpush2.bf16.msra.mxu0 %v3702_v63  ;;  %2496 = vmatpush2.bf16.msra.mxu1 %v3830_v0  ;;  %v3769_v63 = vcombine.high %v1045_v58, %v1049_v60  ;;  %v432_v0 = vsub.s32 2, %v4470_v38  ;;  %v885_v56 = vld [vmem:[#allocation11 + $0xc8] sm:$0xff]  ;;  %v3616_v60 = vcombine.low %v893_v48, %v897_v49 }
 0x166   :  { %2456 = vmatprep.subr.bf16.mxu0 %v3695_v1  ;;  %2497 = vmatprep.subr.bf16.mxu1 %v3823_v2  ;;  %v420_v1 = vld [vmem:[%s4553_s6] sm:$0xf]  ;;  %v436_v2 = vsub.s32 3, %v4470_v38 }
 0x167   :  { %v425_v3 = vrot.slane %v420_v1, %v4473_v39  ;;  %v433_v4 = vrot.slane %v420_v1, %v432_v0  ;;  %v889_v57 = vld [vmem:[#allocation11 + $0xe8] sm:$0xff] }
 0x168   :  { %v1013_v58 = vld [vmem:[#allocation11 + $0x4c8] sm:$0xff] }
 0x169   :  { %2457 = vmatpush2.bf16.msra.mxu0 %v3694_v7  ;;  %2498 = vmatpush2.bf16.msra.mxu1 %v3822_v8  ;;  %v429_v7 = vrot.slane %v420_v1, %v4479_v41  ;;  %v437_v8 = vrot.slane %v420_v1, %v436_v2  ;;  %v877_v1 = vld [vmem:[#allocation11 + $0x88] sm:$0xff] }
 0x16a   :  { %2458 = vmatprep.subr.bf16.mxu0 %v3687_v9  ;;  %2499 = vmatprep.subr.bf16.mxu1 %v3815_v10 }
 0x16d   :  { %2459 = vmatpush2.bf16.msra.mxu0 %v3686_v15  ;;  %2500 = vmatpush2.bf16.msra.mxu1 %v3814_v16 }
 0x16e   :  { %2460 = vmatprep.subr.bf16.mxu0 %v3679_v17  ;;  %2501 = vmatprep.subr.bf16.mxu1 %v3807_v18 }
 0x171   :  { %2461 = vmatpush2.bf16.msra.mxu0 %v3678_v23  ;;  %2502 = vmatpush2.bf16.msra.mxu1 %v3806_v24 }
 0x172   :  { %2462 = vmatprep.subr.bf16.mxu0 %v3671_v25  ;;  %2503 = vmatprep.subr.bf16.mxu1 %v3799_v26  ;;  %v909_v26 = vld [vmem:[#allocation11 + $0x188] sm:$0xff] }
 0x173   :  { %v3632_v44 = vcombine.low %v909_v26, %v913_v27 }
 0x175   :  { %2463 = vmatpush2.bf16.msra.mxu0 %v3670_v31  ;;  %2504 = vmatpush2.bf16.msra.mxu1 %v3798_v32  ;;  %v1041_v31 = vld [vmem:[#allocation11 + $0x5a8] sm:$0xff] }
 0x176   :  { %2464 = vmatprep.subr.bf16.mxu0 %v3663_v33  ;;  %2505 = vmatprep.subr.bf16.mxu1 %v3791_v34  ;;  %v3761_v40 = vcombine.high %v1037_v30, %v1041_v31 }
 0x179   :  { %2465 = vmatpush2.bf16.msra.mxu0 %v3662_v35  ;;  %2506 = vmatpush2.bf16.msra.mxu1 %v3790_v36  ;;  %v3633_v35 = vcombine.high %v909_v26, %v913_v27  ;;  %v901_v36 = vld [vmem:[#allocation11 + $0x148] sm:$0xff] }
 0x17a   :  { %2466 = vmatprep.subr.bf16.mxu0 %v3655_v43  ;;  %2507 = vmatprep.subr.bf16.mxu1 %v3783_v47  ;;  %v1033_v43 = vld [vmem:[#allocation11 + $0x568] sm:$0xff]  ;;  %v3624_v52 = vcombine.low %v901_v36, %v905_v37 }
 0x17b   :  { %v3753_v47 = vcombine.high %v1029_v42, %v1033_v43  ;;  %v981_v26 = vld [vmem:[#allocation11 + $0x3c8] sm:$0xff] }
 0x17c   :  { %v985_v27 = vld [vmem:[#allocation11 + $0x3e8] sm:$0xff] }
 0x17d   :  { %2467 = vmatpush2.bf16.msra.mxu0 %v3654_v45  ;;  %2508 = vmatpush2.bf16.msra.mxu1 %v3782_v46  ;;  %v3760_v45 = vcombine.low %v1037_v30, %v1041_v31  ;;  %v3625_v46 = vcombine.high %v901_v36, %v905_v37  ;;  %v1113_v30 = vld [vmem:[#allocation11 + $0x7e8] sm:$0xff]  ;;  %v3705_v36 = vcombine.high %v981_v26, %v985_v27 }
 0x17e   :  { %2468 = vmatprep.subr.bf16.mxu0 %v3647_v51  ;;  %2509 = vmatprep.subr.bf16.mxu1 %v3775_v55  ;;  %v1025_v51 = vld [vmem:[#allocation11 + $0x528] sm:$0xff] }
 0x17f   :  { %v3745_v55 = vcombine.high %v1021_v50, %v1025_v51 }
 0x181   :  { %2469 = vmatpush2.bf16.msra.mxu0 %v3646_v53  ;;  %2510 = vmatpush2.bf16.msra.mxu1 %v3774_v54  ;;  %v3752_v53 = vcombine.low %v1029_v42, %v1033_v43  ;;  %v3617_v54 = vcombine.high %v893_v48, %v897_v49  ;;  %v977_v42 = vld [vmem:[#allocation11 + $0x3a8] sm:$0xff] }
 0x182   :  { %2520 = vmatprep.subr.bf16.mxu0 %v3641_v59  ;;  %2561 = vmatprep.subr.bf16.mxu1 %v3769_v63  ;;  %v1017_v59 = vld [vmem:[#allocation11 + $0x4e8] sm:$0xff] }
 0x183   :  { %v3737_v63 = vcombine.high %v1013_v58, %v1017_v59  ;;  %v1101_v43 = vld [vmem:[#allocation11 + $0x788] sm:$0xff] }
 0x184   :  { %v965_v49 = vld [vmem:[#allocation11 + $0x348] sm:$0xff] }
 0x204   :  { %v796_v5 = vpop.f32.mrf.mxu0  ;;  %v837_v6 = vpop.f32.mrf.mxu1 }
 0x205   :  { %v797_v9 = vadd.f32 %v796_v5, %v425_v3  ;;  %v838_v10 = vadd.f32 %v837_v6, %v433_v4  ;;  %v881_v3 = vld [vmem:[#allocation11 + $0xa8] sm:$0xff]  ;;  %v3608_v6 = vcombine.low %v885_v56, %v889_v57 }
 0x206   :  { %v798_v11 = vpop.f32.mrf.mxu0  ;;  %v839_v12 = vpop.f32.mrf.mxu1  ;;  %v1005_v4 = vld [vmem:[#allocation11 + $0x488] sm:$0xff] }
 0x207   :  { %v848_v13 = vmul.f32 0.2, %v797_v9  ;;  %vm844_vm5 = vcmp.gt.f32.partialorder %v797_v9, 0.0  ;;  %v850_v14 = vmul.f32 0.2, %v838_v10  ;;  %v799_v15 = vadd.f32 %v798_v11, %v429_v7  ;;  %v1009_v5 = vld [vmem:[#allocation11 + $0x4a8] sm:$0xff] }
 0x208   :  { %v840_v16 = vadd.f32 %v839_v12, %v437_v8  ;;  %v800_v17 = vpop.f32.mrf.mxu0  ;;  %v841_v18 = vpop.f32.mrf.mxu1  ;;  %vm846_vm6 = vcmp.gt.f32.partialorder %v838_v10, 0.0  ;;  %v3736_v7 = vcombine.low %v1013_v58, %v1017_v59  ;;  %v3601_v8 = vcombine.high %v877_v1, %v881_v3  ;;  %v873_v11 = vld [vmem:[#allocation11 + $0x68] sm:$0xff] }
 0x209   :  { %vm845_vm7 = vcmp.gt.f32.partialorder %v799_v15, 0.0  ;;  %v849_v19 = vmul.f32 0.2, %v799_v15  ;;  %v852_v22 = vsel %vm844_vm5, %v797_v9, %v848_v13  ;;  %v854_v24 = vsel %vm846_vm6, %v838_v10, %v850_v14  ;;  %v869_v10 = vld [vmem:[#allocation11 + $0x48] sm:$0xff] }
 0x20a   :  { %v801_v20 = vpop.f32.mrf.mxu0  ;;  %v842_v21 = vpop.f32.mrf.mxu1  ;;  %vm847_vm8 = vcmp.gt.f32.partialorder %v840_v16, 0.0  ;;  %v851_v23 = vmul.f32 0.2, %v840_v16  ;;  %v4496_v32 = vpack.c.bf16 %v852_v22, %v852_v22  ;;  %v4500_v34 = vpack.c.bf16 %v854_v24, %v854_v24  ;;  %v997_v12 = vld [vmem:[#allocation11 + $0x448] sm:$0xff] }
 0x20b   :  { %v853_v25 = vsel %vm845_vm7, %v799_v15, %v849_v19  ;;  %v3729_v9 = vcombine.high %v1005_v4, %v1009_v5  ;;  %v1001_v13 = vld [vmem:[#allocation11 + $0x468] sm:$0xff]  ;;  %v3600_v14 = vcombine.low %v877_v1, %v881_v3  ;;  %v3728_v15 = vcombine.low %v1005_v4, %v1009_v5 }
 0x20c   :  { %v4494_v28 = vpack.c.bf16 %v853_v25, %v853_v25  ;;  %v855_v29 = vsel %vm847_vm8, %v840_v16, %v851_v23  ;;  %v3593_v16 = vcombine.high %v869_v10, %v873_v11  ;;  %v3721_v17 = vcombine.high %v997_v12, %v1001_v13  ;;  %v861_v18 = vld [vmem:[#allocation11 + $0x8] sm:$0xff] }
 0x20d   :  { %v4498_v33 = vpack.c.bf16 %v855_v29, %v855_v29  ;;  %v865_v19 = vld [vmem:[#allocation11 + $0x28] sm:$0xff]  ;;  %v3592_v22 = vcombine.low %v869_v10, %v873_v11  ;;  %v3720_v23 = vcombine.low %v997_v12, %v1001_v13 }
 0x20e   :  { %2470 = vmatprep.mubr.bf16.mxu0 %v4494_v28  ;;  %v989_v20 = vld [vmem:[#allocation11 + $0x408] sm:$0xff]  ;;  %v3585_v24 = vcombine.high %v861_v18, %v865_v19  ;;  %v3584_v31 = vcombine.low %v861_v18, %v865_v19 }
 0x20f   :  { %2511 = vmatprep.mubr.bf16.mxu1 %v4498_v33  ;;  %2471 = vmatmul.mubr.bf16.vlgmr.msra.gmra.mxu0 %v4496_v32  ;;  %v993_v21 = vld [vmem:[#allocation11 + $0x428] sm:$0xff] }
 0x210   :  { %2512 = vmatmul.mubr.bf16.vlgmr.msra.gmra.mxu1 %v4500_v34  ;;  %2521 = vmatpush1.bf16.msra.mxu0 %v3640_v61  ;;  %v3744_v61 = vcombine.low %v1021_v50, %v1025_v51  ;;  %v3713_v25 = vcombine.high %v989_v20, %v993_v21  ;;  %v1109_v29 = vld [vmem:[#allocation11 + $0x7c8] sm:$0xff] }
 0x211   :  { %2562 = vmatpush1.bf16.msra.mxu1 %v3768_v62  ;;  %2552 = vmatprep.mubr.bf16.mxu0 %v4494_v28  ;;  %v3609_v62 = vcombine.high %v885_v56, %v889_v57  ;;  %v3833_v37 = vcombine.high %v1109_v29, %v1113_v30  ;;  %v969_v50 = vld [vmem:[#allocation11 + $0x368] sm:$0xff] }
 0x212   :  { %2593 = vmatprep.mubr.bf16.mxu1 %v4498_v33  ;;  %2522 = vmatprep.subr.bf16.mxu0 %v3633_v35  ;;  %v3712_v35 = vcombine.low %v989_v20, %v993_v21  ;;  %v1093_v51 = vld [vmem:[#allocation11 + $0x748] sm:$0xff] }
 0x213   :  { %2563 = vmatprep.subr.bf16.mxu1 %v3761_v40  ;;  %v973_v40 = vld [vmem:[#allocation11 + $0x388] sm:$0xff] }
 0x214   :  { %2523 = vmatpush1.bf16.msra.mxu0 %v3632_v44  ;;  %v1105_v44 = vld [vmem:[#allocation11 + $0x7a8] sm:$0xff] }
 0x215   :  { %2564 = vmatpush1.bf16.msra.mxu1 %v3760_v45  ;;  %2524 = vmatprep.subr.bf16.mxu0 %v3625_v46  ;;  %v3704_v45 = vcombine.low %v981_v26, %v985_v27  ;;  %v3832_v46 = vcombine.low %v1109_v29, %v1113_v30  ;;  %v3825_v48 = vcombine.high %v1101_v43, %v1105_v44  ;;  %v957_v57 = vld [vmem:[#allocation11 + $0x308] sm:$0xff] }
 0x216   :  { %2565 = vmatprep.subr.bf16.mxu1 %v3753_v47  ;;  %v3697_v47 = vcombine.high %v973_v40, %v977_v42  ;;  %v961_v58 = vld [vmem:[#allocation11 + $0x328] sm:$0xff] }
 0x217   :  { %v1085_v59 = vld [vmem:[#allocation11 + $0x708] sm:$0xff] }
 0x218   :  { %2525 = vmatpush1.bf16.msra.mxu0 %v3624_v52  ;;  %v1097_v52 = vld [vmem:[#allocation11 + $0x768] sm:$0xff] }
 0x219   :  { %2566 = vmatpush1.bf16.msra.mxu1 %v3752_v53  ;;  %2526 = vmatprep.subr.bf16.mxu0 %v3617_v54  ;;  %v3696_v53 = vcombine.low %v973_v40, %v977_v42  ;;  %v3824_v54 = vcombine.low %v1101_v43, %v1105_v44  ;;  %v3817_v56 = vcombine.high %v1093_v51, %v1097_v52  ;;  %v949_v3 = vld [vmem:[#allocation11 + $0x2c8] sm:$0xff]  ;;  %v918_v42 = vld [vmem:[#allocation11 + $0x1d0] sm:$0xff] }
 0x21a   :  { %2567 = vmatprep.subr.bf16.mxu1 %v3745_v55  ;;  %v3689_v55 = vcombine.high %v965_v49, %v969_v50  ;;  %v953_v4 = vld [vmem:[#allocation11 + $0x2e8] sm:$0xff]  ;;  %v922_v43 = vld [vmem:[#allocation11 + $0x1f0] sm:$0xff] }
 0x21b   :  { %v1077_v5 = vld [vmem:[#allocation11 + $0x6c8] sm:$0xff]  ;;  %v1046_v44 = vld [vmem:[#allocation11 + $0x5d0] sm:$0xff] }
 0x21c   :  { %2527 = vmatpush1.bf16.msra.mxu0 %v3616_v60  ;;  %v1089_v60 = vld [vmem:[#allocation11 + $0x728] sm:$0xff] }
 0x21d   :  { %2568 = vmatpush1.bf16.msra.mxu1 %v3744_v61  ;;  %2528 = vmatprep.subr.bf16.mxu0 %v3609_v62  ;;  %v3688_v61 = vcombine.low %v965_v49, %v969_v50  ;;  %v3816_v62 = vcombine.low %v1093_v51, %v1097_v52  ;;  %v3809_v1 = vcombine.high %v1085_v59, %v1089_v60  ;;  %v941_v11 = vld [vmem:[#allocation11 + $0x288] sm:$0xff]  ;;  %v910_v50 = vld [vmem:[#allocation11 + $0x190] sm:$0xff] }
 0x21e   :  { %2569 = vmatprep.subr.bf16.mxu1 %v3737_v63  ;;  %v3681_v63 = vcombine.high %v957_v57, %v961_v58  ;;  %v945_v12 = vld [vmem:[#allocation11 + $0x2a8] sm:$0xff]  ;;  %v914_v51 = vld [vmem:[#allocation11 + $0x1b0] sm:$0xff]  ;;  %v3642_v52 = vcombine.low %v918_v42, %v922_v43 }
 0x21f   :  { %v1069_v13 = vld [vmem:[#allocation11 + $0x688] sm:$0xff] }
 0x220   :  { %2529 = vmatpush1.bf16.msra.mxu0 %v3608_v6  ;;  %v1081_v6 = vld [vmem:[#allocation11 + $0x6e8] sm:$0xff] }
 0x221   :  { %2570 = vmatpush1.bf16.msra.mxu1 %v3736_v7  ;;  %2530 = vmatprep.subr.bf16.mxu0 %v3601_v8  ;;  %v3680_v7 = vcombine.low %v957_v57, %v961_v58  ;;  %v3808_v8 = vcombine.low %v1085_v59, %v1089_v60  ;;  %v3801_v10 = vcombine.high %v1077_v5, %v1081_v6  ;;  %v933_v19 = vld [vmem:[#allocation11 + $0x248] sm:$0xff]  ;;  %v902_v57 = vld [vmem:[#allocation11 + $0x150] sm:$0xff] }
 0x222   :  { %2571 = vmatprep.subr.bf16.mxu1 %v3729_v9  ;;  %v3673_v9 = vcombine.high %v949_v3, %v953_v4  ;;  %v937_v20 = vld [vmem:[#allocation11 + $0x268] sm:$0xff]  ;;  %v906_v58 = vld [vmem:[#allocation11 + $0x170] sm:$0xff] }
 0x223   :  { %v1061_v21 = vld [vmem:[#allocation11 + $0x648] sm:$0xff]  ;;  %v1030_v60 = vld [vmem:[#allocation11 + $0x550] sm:$0xff] }
 0x224   :  { %2531 = vmatpush1.bf16.msra.mxu0 %v3600_v14  ;;  %v1073_v14 = vld [vmem:[#allocation11 + $0x6a8] sm:$0xff] }
 0x225   :  { %2572 = vmatpush1.bf16.msra.mxu1 %v3728_v15  ;;  %2532 = vmatprep.subr.bf16.mxu0 %v3593_v16  ;;  %v3672_v15 = vcombine.low %v949_v3, %v953_v4  ;;  %v3800_v16 = vcombine.low %v1077_v5, %v1081_v6  ;;  %v3793_v18 = vcombine.high %v1069_v13, %v1073_v14  ;;  %v925_v27 = vld [vmem:[#allocation11 + $0x208] sm:$0xff]  ;;  %v894_v4 = vld [vmem:[#allocation11 + $0x110] sm:$0xff] }
 0x226   :  { %2573 = vmatprep.subr.bf16.mxu1 %v3721_v17  ;;  %v3665_v17 = vcombine.high %v941_v11, %v945_v12  ;;  %v929_v29 = vld [vmem:[#allocation11 + $0x228] sm:$0xff]  ;;  %v898_v5 = vld [vmem:[#allocation11 + $0x130] sm:$0xff] }
 0x227   :  { %v1053_v30 = vld [vmem:[#allocation11 + $0x608] sm:$0xff]  ;;  %v1022_v6 = vld [vmem:[#allocation11 + $0x510] sm:$0xff] }
 0x228   :  { %2533 = vmatpush1.bf16.msra.mxu0 %v3592_v22  ;;  %v1065_v22 = vld [vmem:[#allocation11 + $0x668] sm:$0xff] }
 0x229   :  { %2574 = vmatpush1.bf16.msra.mxu1 %v3720_v23  ;;  %2534 = vmatprep.subr.bf16.mxu0 %v3585_v24  ;;  %v3664_v23 = vcombine.low %v941_v11, %v945_v12  ;;  %v3792_v24 = vcombine.low %v1069_v13, %v1073_v14  ;;  %v3785_v26 = vcombine.high %v1061_v21, %v1065_v22  ;;  %v886_v12 = vld [vmem:[#allocation11 + $0xd0] sm:$0xff] }
 0x22a   :  { %2575 = vmatprep.subr.bf16.mxu1 %v3713_v25  ;;  %v3657_v25 = vcombine.high %v933_v19, %v937_v20  ;;  %v890_v13 = vld [vmem:[#allocation11 + $0xf0] sm:$0xff] }
 0x22b   :  { %v1014_v14 = vld [vmem:[#allocation11 + $0x4d0] sm:$0xff] }
 0x22c   :  { %2535 = vmatpush1.bf16.msra.mxu0 %v3584_v31  ;;  %v1057_v31 = vld [vmem:[#allocation11 + $0x628] sm:$0xff] }
 0x22d   :  { %2576 = vmatpush1.bf16.msra.mxu1 %v3712_v35  ;;  %2536 = vmatprep.subr.bf16.mxu0 %v3705_v36  ;;  %v3656_v35 = vcombine.low %v933_v19, %v937_v20  ;;  %v3784_v36 = vcombine.low %v1061_v21, %v1065_v22  ;;  %v3777_v40 = vcombine.high %v1053_v30, %v1057_v31  ;;  %v878_v20 = vld [vmem:[#allocation11 + $0x90] sm:$0xff] }
 0x22e   :  { %2577 = vmatprep.subr.bf16.mxu1 %v3833_v37  ;;  %v3649_v37 = vcombine.high %v925_v27, %v929_v29  ;;  %v882_v21 = vld [vmem:[#allocation11 + $0xb0] sm:$0xff] }
 0x22f   :  { %v1006_v22 = vld [vmem:[#allocation11 + $0x490] sm:$0xff] }
 0x230   :  { %2537 = vmatpush2.bf16.msra.mxu0 %v3704_v45  ;;  %v1050_v45 = vld [vmem:[#allocation11 + $0x5f0] sm:$0xff] }
 0x231   :  { %2578 = vmatpush2.bf16.msra.mxu1 %v3832_v46  ;;  %2538 = vmatprep.subr.bf16.mxu0 %v3697_v47  ;;  %v3648_v46 = vcombine.low %v925_v27, %v929_v29  ;;  %v3776_v47 = vcombine.low %v1053_v30, %v1057_v31  ;;  %v3771_v49 = vcombine.high %v1046_v44, %v1050_v45  ;;  %v870_v29 = vld [vmem:[#allocation11 + $0x50] sm:$0xff] }
 0x232   :  { %2579 = vmatprep.subr.bf16.mxu1 %v3825_v48  ;;  %v3643_v48 = vcombine.high %v918_v42, %v922_v43  ;;  %v874_v30 = vld [vmem:[#allocation11 + $0x70] sm:$0xff] }
 0x233   :  { %v998_v31 = vld [vmem:[#allocation11 + $0x450] sm:$0xff] }
 0x234   :  { %2539 = vmatpush2.bf16.msra.mxu0 %v3696_v53  ;;  %v1038_v53 = vld [vmem:[#allocation11 + $0x590] sm:$0xff] }
 0x235   :  { %2580 = vmatpush2.bf16.msra.mxu1 %v3824_v54  ;;  %2540 = vmatprep.subr.bf16.mxu0 %v3689_v55  ;;  %v1042_v54 = vld [vmem:[#allocation11 + $0x5b0] sm:$0xff]  ;;  %v3770_v55 = vcombine.low %v1046_v44, %v1050_v45 }
 0x236   :  { %2581 = vmatprep.subr.bf16.mxu1 %v3817_v56  ;;  %v3635_v56 = vcombine.high %v910_v50, %v914_v51  ;;  %v3763_v59 = vcombine.high %v1038_v53, %v1042_v54  ;;  %v862_v43 = vld [vmem:[#allocation11 + $0x10] sm:$0xff] }
 0x237   :  { %v866_v44 = vld [vmem:[#allocation11 + $0x30] sm:$0xff] }
 0x238   :  { %2541 = vmatpush2.bf16.msra.mxu0 %v3688_v61  ;;  %v1034_v61 = vld [vmem:[#allocation11 + $0x570] sm:$0xff] }
 0x239   :  { %2582 = vmatpush2.bf16.msra.mxu1 %v3816_v62  ;;  %2542 = vmatprep.subr.bf16.mxu0 %v3681_v63  ;;  %v3634_v62 = vcombine.low %v910_v50, %v914_v51  ;;  %v3762_v63 = vcombine.low %v1038_v53, %v1042_v54  ;;  %v3755_v3 = vcombine.high %v1030_v60, %v1034_v61  ;;  %v990_v45 = vld [vmem:[#allocation11 + $0x410] sm:$0xff] }
 0x23a   :  { %2583 = vmatprep.subr.bf16.mxu1 %v3809_v1  ;;  %v3627_v1 = vcombine.high %v902_v57, %v906_v58  ;;  %v982_v51 = vld [vmem:[#allocation11 + $0x3d0] sm:$0xff] }
 0x23b   :  { %v1110_v53 = vld [vmem:[#allocation11 + $0x7d0] sm:$0xff] }
 0x23c   :  { %2543 = vmatpush2.bf16.msra.mxu0 %v3680_v7  ;;  %v1026_v7 = vld [vmem:[#allocation11 + $0x530] sm:$0xff] }
 0x23d   :  { %2584 = vmatpush2.bf16.msra.mxu1 %v3808_v8  ;;  %2544 = vmatprep.subr.bf16.mxu0 %v3673_v9  ;;  %v3626_v8 = vcombine.low %v902_v57, %v906_v58  ;;  %v3754_v9 = vcombine.low %v1030_v60, %v1034_v61  ;;  %v3747_v11 = vcombine.high %v1022_v6, %v1026_v7  ;;  %v1114_v54 = vld [vmem:[#allocation11 + $0x7f0] sm:$0xff] }
 0x23e   :  { %2585 = vmatprep.subr.bf16.mxu1 %v3801_v10  ;;  %v3619_v10 = vcombine.high %v894_v4, %v898_v5  ;;  %v3835_v58 = vcombine.high %v1110_v53, %v1114_v54  ;;  %v978_v60 = vld [vmem:[#allocation11 + $0x3b0] sm:$0xff] }
 0x23f   :  { %v1102_v61 = vld [vmem:[#allocation11 + $0x790] sm:$0xff] }
 0x240   :  { %2545 = vmatpush2.bf16.msra.mxu0 %v3672_v15  ;;  %v1018_v15 = vld [vmem:[#allocation11 + $0x4f0] sm:$0xff] }
 0x241   :  { %2586 = vmatpush2.bf16.msra.mxu1 %v3800_v16  ;;  %2546 = vmatprep.subr.bf16.mxu0 %v3665_v17  ;;  %v3618_v16 = vcombine.low %v894_v4, %v898_v5  ;;  %v3746_v17 = vcombine.low %v1022_v6, %v1026_v7  ;;  %v3739_v19 = vcombine.high %v1014_v14, %v1018_v15  ;;  %v966_v5 = vld [vmem:[#allocation11 + $0x350] sm:$0xff] }
 0x242   :  { %2587 = vmatprep.subr.bf16.mxu1 %v3793_v18  ;;  %v3611_v18 = vcombine.high %v886_v12, %v890_v13  ;;  %v970_v6 = vld [vmem:[#allocation11 + $0x370] sm:$0xff] }
 0x243   :  { %v1094_v7 = vld [vmem:[#allocation11 + $0x750] sm:$0xff] }
 0x244   :  { %2547 = vmatpush2.bf16.msra.mxu0 %v3664_v23  ;;  %v1010_v23 = vld [vmem:[#allocation11 + $0x4b0] sm:$0xff] }
 0x245   :  { %2588 = vmatpush2.bf16.msra.mxu1 %v3792_v24  ;;  %2548 = vmatprep.subr.bf16.mxu0 %v3657_v25  ;;  %v3610_v24 = vcombine.low %v886_v12, %v890_v13  ;;  %v3738_v25 = vcombine.low %v1014_v14, %v1018_v15  ;;  %v3731_v27 = vcombine.high %v1006_v22, %v1010_v23  ;;  %v958_v13 = vld [vmem:[#allocation11 + $0x310] sm:$0xff] }
 0x246   :  { %2589 = vmatprep.subr.bf16.mxu1 %v3785_v26  ;;  %v3603_v26 = vcombine.high %v878_v20, %v882_v21  ;;  %v962_v14 = vld [vmem:[#allocation11 + $0x330] sm:$0xff] }
 0x247   :  { %v1086_v15 = vld [vmem:[#allocation11 + $0x710] sm:$0xff] }
 0x248   :  { %2549 = vmatpush2.bf16.msra.mxu0 %v3656_v35  ;;  %v1002_v35 = vld [vmem:[#allocation11 + $0x470] sm:$0xff] }
 0x249   :  { %2590 = vmatpush2.bf16.msra.mxu1 %v3784_v36  ;;  %2550 = vmatprep.subr.bf16.mxu0 %v3649_v37  ;;  %v3602_v36 = vcombine.low %v878_v20, %v882_v21  ;;  %v3730_v37 = vcombine.low %v1006_v22, %v1010_v23  ;;  %v3723_v42 = vcombine.high %v998_v31, %v1002_v35  ;;  %v950_v21 = vld [vmem:[#allocation11 + $0x2d0] sm:$0xff] }
 0x24a   :  { %2591 = vmatprep.subr.bf16.mxu1 %v3777_v40  ;;  %v3595_v40 = vcombine.high %v870_v29, %v874_v30  ;;  %v954_v22 = vld [vmem:[#allocation11 + $0x2f0] sm:$0xff] }
 0x24b   :  { %v1078_v23 = vld [vmem:[#allocation11 + $0x6d0] sm:$0xff] }
 0x24c   :  { %2551 = vmatpush2.bf16.msra.mxu0 %v3648_v46  ;;  %v994_v46 = vld [vmem:[#allocation11 + $0x430] sm:$0xff] }
 0x24d   :  { %2592 = vmatpush2.bf16.msra.mxu1 %v3776_v47  ;;  %2602 = vmatprep.subr.bf16.mxu0 %v3643_v48  ;;  %v3594_v47 = vcombine.low %v870_v29, %v874_v30  ;;  %v3722_v48 = vcombine.low %v998_v31, %v1002_v35  ;;  %v3715_v50 = vcombine.high %v990_v45, %v994_v46  ;;  %v942_v30 = vld [vmem:[#allocation11 + $0x290] sm:$0xff] }
 0x24e   :  { %2643 = vmatprep.subr.bf16.mxu1 %v3771_v49  ;;  %v3587_v49 = vcombine.high %v862_v43, %v866_v44  ;;  %v946_v31 = vld [vmem:[#allocation11 + $0x2b0] sm:$0xff] }
 0x24f   :  { %2553 = vmatmul.mubr.bf16.vlgmr.msra.gmra.mxu0 %v4496_v32  ;;  %v1070_v35 = vld [vmem:[#allocation11 + $0x690] sm:$0xff] }
 0x250   :  { %2594 = vmatmul.mubr.bf16.vlgmr.msra.gmra.mxu1 %v4500_v34  ;;  %2603 = vmatpush1.bf16.msra.mxu0 %v3642_v52  ;;  %v986_v52 = vld [vmem:[#allocation11 + $0x3f0] sm:$0xff] }
 0x251   :  { %2634 = vmatprep.mubr.bf16.mxu0 %v4494_v28  ;;  %2644 = vmatpush1.bf16.msra.mxu1 %v3770_v55  ;;  %v3586_v55 = vcombine.low %v862_v43, %v866_v44  ;;  %v3707_v57 = vcombine.high %v982_v51, %v986_v52  ;;  %v934_v44 = vld [vmem:[#allocation11 + $0x250] sm:$0xff] }
 0x252   :  { %2675 = vmatprep.mubr.bf16.mxu1 %v4498_v33  ;;  %2604 = vmatprep.subr.bf16.mxu0 %v3635_v56  ;;  %v3714_v56 = vcombine.low %v990_v45, %v994_v46  ;;  %v938_v45 = vld [vmem:[#allocation11 + $0x270] sm:$0xff] }
 0x253   :  { %2645 = vmatprep.subr.bf16.mxu1 %v3763_v59  ;;  %v974_v59 = vld [vmem:[#allocation11 + $0x390] sm:$0xff] }
 0x254   :  { %2605 = vmatpush1.bf16.msra.mxu0 %v3634_v62  ;;  %v1106_v62 = vld [vmem:[#allocation11 + $0x7b0] sm:$0xff] }
 0x255   :  { %2646 = vmatpush1.bf16.msra.mxu1 %v3762_v63  ;;  %2606 = vmatprep.subr.bf16.mxu0 %v3627_v1  ;;  %v3706_v63 = vcombine.low %v982_v51, %v986_v52  ;;  %v3834_v1 = vcombine.low %v1110_v53, %v1114_v54  ;;  %v3827_v4 = vcombine.high %v1102_v61, %v1106_v62  ;;  %v1062_v46 = vld [vmem:[#allocation11 + $0x650] sm:$0xff] }
 0x256   :  { %2647 = vmatprep.subr.bf16.mxu1 %v3755_v3  ;;  %v3699_v3 = vcombine.high %v974_v59, %v978_v60  ;;  %v926_v52 = vld [vmem:[#allocation11 + $0x210] sm:$0xff] }
 0x257   :  { %v930_v53 = vld [vmem:[#allocation11 + $0x230] sm:$0xff] }
 0x258   :  { %2607 = vmatpush1.bf16.msra.mxu0 %v3626_v8  ;;  %v1098_v8 = vld [vmem:[#allocation11 + $0x770] sm:$0xff] }
 0x259   :  { %2648 = vmatpush1.bf16.msra.mxu1 %v3754_v9  ;;  %2608 = vmatprep.subr.bf16.mxu0 %v3619_v10  ;;  %v3698_v9 = vcombine.low %v974_v59, %v978_v60  ;;  %v3826_v10 = vcombine.low %v1102_v61, %v1106_v62  ;;  %v3819_v12 = vcombine.high %v1094_v7, %v1098_v8  ;;  %v1054_v54 = vld [vmem:[#allocation11 + $0x610] sm:$0xff]  ;;  %v919_v60 = vld [vmem:[#allocation11 + $0x1d8] sm:$0xff] }
 0x25a   :  { %2649 = vmatprep.subr.bf16.mxu1 %v3747_v11  ;;  %v3691_v11 = vcombine.high %v966_v5, %v970_v6  ;;  %v923_v61 = vld [vmem:[#allocation11 + $0x1f8] sm:$0xff] }
 0x25b   :  { %v1047_v62 = vld [vmem:[#allocation11 + $0x5d8] sm:$0xff] }
 0x25c   :  { %2609 = vmatpush1.bf16.msra.mxu0 %v3618_v16  ;;  %v1090_v16 = vld [vmem:[#allocation11 + $0x730] sm:$0xff] }
 0x25d   :  { %2650 = vmatpush1.bf16.msra.mxu1 %v3746_v17  ;;  %2610 = vmatprep.subr.bf16.mxu0 %v3611_v18  ;;  %v3690_v17 = vcombine.low %v966_v5, %v970_v6  ;;  %v3818_v18 = vcombine.low %v1094_v7, %v1098_v8  ;;  %v3811_v20 = vcombine.high %v1086_v15, %v1090_v16  ;;  %v911_v6 = vld [vmem:[#allocation11 + $0x198] sm:$0xff] }
 0x25e   :  { %2651 = vmatprep.subr.bf16.mxu1 %v3739_v19  ;;  %v3683_v19 = vcombine.high %v958_v13, %v962_v14  ;;  %v915_v7 = vld [vmem:[#allocation11 + $0x1b8] sm:$0xff]  ;;  %v3644_v8 = vcombine.low %v919_v60, %v923_v61 }
 0x260   :  { %2611 = vmatpush1.bf16.msra.mxu0 %v3610_v24  ;;  %v1082_v24 = vld [vmem:[#allocation11 + $0x6f0] sm:$0xff] }
 0x261   :  { %2652 = vmatpush1.bf16.msra.mxu1 %v3738_v25  ;;  %2612 = vmatprep.subr.bf16.mxu0 %v3603_v26  ;;  %v3682_v25 = vcombine.low %v958_v13, %v962_v14  ;;  %v3810_v26 = vcombine.low %v1086_v15, %v1090_v16  ;;  %v3803_v29 = vcombine.high %v1078_v23, %v1082_v24  ;;  %v903_v13 = vld [vmem:[#allocation11 + $0x158] sm:$0xff] }
 0x262   :  { %2653 = vmatprep.subr.bf16.mxu1 %v3731_v27  ;;  %v3675_v27 = vcombine.high %v950_v21, %v954_v22  ;;  %v907_v14 = vld [vmem:[#allocation11 + $0x178] sm:$0xff] }
 0x263   :  { %v1031_v16 = vld [vmem:[#allocation11 + $0x558] sm:$0xff] }
 0x264   :  { %2613 = vmatpush1.bf16.msra.mxu0 %v3602_v36  ;;  %v1074_v36 = vld [vmem:[#allocation11 + $0x6b0] sm:$0xff] }
 0x265   :  { %2654 = vmatpush1.bf16.msra.mxu1 %v3730_v37  ;;  %2614 = vmatprep.subr.bf16.mxu0 %v3595_v40  ;;  %v3674_v37 = vcombine.low %v950_v21, %v954_v22  ;;  %v3802_v40 = vcombine.low %v1078_v23, %v1082_v24  ;;  %v3795_v43 = vcombine.high %v1070_v35, %v1074_v36  ;;  %v895_v22 = vld [vmem:[#allocation11 + $0x118] sm:$0xff] }
 0x266   :  { %2655 = vmatprep.subr.bf16.mxu1 %v3723_v42  ;;  %v3667_v42 = vcombine.high %v942_v30, %v946_v31  ;;  %v899_v23 = vld [vmem:[#allocation11 + $0x138] sm:$0xff] }
 0x267   :  { %v1023_v24 = vld [vmem:[#allocation11 + $0x518] sm:$0xff] }
 0x268   :  { %2615 = vmatpush1.bf16.msra.mxu0 %v3594_v47  ;;  %v1066_v47 = vld [vmem:[#allocation11 + $0x670] sm:$0xff] }
 0x269   :  { %2656 = vmatpush1.bf16.msra.mxu1 %v3722_v48  ;;  %2616 = vmatprep.subr.bf16.mxu0 %v3587_v49  ;;  %v3666_v48 = vcombine.low %v942_v30, %v946_v31  ;;  %v3794_v49 = vcombine.low %v1070_v35, %v1074_v36  ;;  %v3787_v51 = vcombine.high %v1062_v46, %v1066_v47  ;;  %v887_v30 = vld [vmem:[#allocation11 + $0xd8] sm:$0xff] }
 0x26a   :  { %2657 = vmatprep.subr.bf16.mxu1 %v3715_v50  ;;  %v3659_v50 = vcombine.high %v934_v44, %v938_v45  ;;  %v891_v31 = vld [vmem:[#allocation11 + $0xf8] sm:$0xff] }
 0x26b   :  { %v1015_v35 = vld [vmem:[#allocation11 + $0x4d8] sm:$0xff] }
 0x26c   :  { %2617 = vmatpush1.bf16.msra.mxu0 %v3586_v55  ;;  %v1058_v55 = vld [vmem:[#allocation11 + $0x630] sm:$0xff]  ;;  %v1019_v36 = vld [vmem:[#allocation11 + $0x4f8] sm:$0xff] }
 0x26d   :  { %2658 = vmatpush1.bf16.msra.mxu1 %v3714_v56  ;;  %2618 = vmatprep.subr.bf16.mxu0 %v3707_v57  ;;  %v3658_v56 = vcombine.low %v934_v44, %v938_v45  ;;  %v3786_v57 = vcombine.low %v1062_v46, %v1066_v47  ;;  %v3779_v59 = vcombine.high %v1054_v54, %v1058_v55  ;;  %v883_v44 = vld [vmem:[#allocation11 + $0xb8] sm:$0xff] }
 0x26e   :  { %2659 = vmatprep.subr.bf16.mxu1 %v3835_v58  ;;  %v3651_v58 = vcombine.high %v926_v52, %v930_v53  ;;  %v1007_v45 = vld [vmem:[#allocation11 + $0x498] sm:$0xff]  ;;  %v3612_v47 = vcombine.low %v887_v30, %v891_v31 }
 0x26f   :  { %v1011_v46 = vld [vmem:[#allocation11 + $0x4b8] sm:$0xff] }
 0x270   :  { %2619 = vmatpush2.bf16.msra.mxu0 %v3706_v63  ;;  %v1051_v63 = vld [vmem:[#allocation11 + $0x5f8] sm:$0xff] }
 0x271   :  { %2660 = vmatpush2.bf16.msra.mxu1 %v3834_v1  ;;  %2620 = vmatprep.subr.bf16.mxu0 %v3699_v3  ;;  %v3650_v1 = vcombine.low %v926_v52, %v930_v53  ;;  %v3778_v3 = vcombine.low %v1054_v54, %v1058_v55  ;;  %v3773_v5 = vcombine.high %v1047_v62, %v1051_v63  ;;  %v875_v52 = vld [vmem:[#allocation11 + $0x78] sm:$0xff] }
 0x272   :  { %2661 = vmatprep.subr.bf16.mxu1 %v3827_v4  ;;  %v3645_v4 = vcombine.high %v919_v60, %v923_v61  ;;  %v999_v53 = vld [vmem:[#allocation11 + $0x458] sm:$0xff] }
 0x273   :  { %v1003_v54 = vld [vmem:[#allocation11 + $0x478] sm:$0xff] }
 0x274   :  { %2621 = vmatpush2.bf16.msra.mxu0 %v3698_v9  ;;  %v1039_v9 = vld [vmem:[#allocation11 + $0x598] sm:$0xff] }
 0x275   :  { %2662 = vmatpush2.bf16.msra.mxu1 %v3826_v10  ;;  %2622 = vmatprep.subr.bf16.mxu0 %v3691_v11  ;;  %v1043_v10 = vld [vmem:[#allocation11 + $0x5b8] sm:$0xff]  ;;  %v3772_v11 = vcombine.low %v1047_v62, %v1051_v63 }
 0x276   :  { %2663 = vmatprep.subr.bf16.mxu1 %v3819_v12  ;;  %v3637_v12 = vcombine.high %v911_v6, %v915_v7  ;;  %v3765_v15 = vcombine.high %v1039_v9, %v1043_v10  ;;  %v867_v60 = vld [vmem:[#allocation11 + $0x38] sm:$0xff] }
 0x277   :  { %v991_v61 = vld [vmem:[#allocation11 + $0x418] sm:$0xff] }
 0x278   :  { %2623 = vmatpush2.bf16.msra.mxu0 %v3690_v17  ;;  %v1035_v17 = vld [vmem:[#allocation11 + $0x578] sm:$0xff] }
 0x279   :  { %2664 = vmatpush2.bf16.msra.mxu1 %v3818_v18  ;;  %2624 = vmatprep.subr.bf16.mxu0 %v3683_v19  ;;  %v3636_v18 = vcombine.low %v911_v6, %v915_v7  ;;  %v3764_v19 = vcombine.low %v1039_v9, %v1043_v10  ;;  %v3757_v21 = vcombine.high %v1031_v16, %v1035_v17  ;;  %v995_v62 = vld [vmem:[#allocation11 + $0x438] sm:$0xff] }
 0x27a   :  { %2665 = vmatprep.subr.bf16.mxu1 %v3811_v20  ;;  %v3629_v20 = vcombine.high %v903_v13, %v907_v14  ;;  %v987_v6 = vld [vmem:[#allocation11 + $0x3f8] sm:$0xff]  ;;  %v3716_v10 = vcombine.low %v991_v61, %v995_v62 }
 0x27b   :  { %v1111_v7 = vld [vmem:[#allocation11 + $0x7d8] sm:$0xff] }
 0x27c   :  { %2625 = vmatpush2.bf16.msra.mxu0 %v3682_v25  ;;  %v1027_v25 = vld [vmem:[#allocation11 + $0x538] sm:$0xff] }
 0x27d   :  { %2666 = vmatpush2.bf16.msra.mxu1 %v3810_v26  ;;  %2626 = vmatprep.subr.bf16.mxu0 %v3675_v27  ;;  %v3628_v26 = vcombine.low %v903_v13, %v907_v14  ;;  %v3756_v27 = vcombine.low %v1031_v16, %v1035_v17  ;;  %v975_v13 = vld [vmem:[#allocation11 + $0x398] sm:$0xff] }
 0x27e   :  { %2667 = vmatprep.subr.bf16.mxu1 %v3803_v29  ;;  %v3621_v29 = vcombine.high %v895_v22, %v899_v23  ;;  %v979_v14 = vld [vmem:[#allocation11 + $0x3b8] sm:$0xff] }
 0x27f   :  { %v1107_v16 = vld [vmem:[#allocation11 + $0x7b8] sm:$0xff] }
 0x280   :  { %2627 = vmatpush2.bf16.msra.mxu0 %v3674_v37  ;;  %v3748_v37 = vcombine.low %v1023_v24, %v1027_v25 }
 0x281   :  { %2668 = vmatpush2.bf16.msra.mxu1 %v3802_v40  ;;  %2628 = vmatprep.subr.bf16.mxu0 %v3667_v42  ;;  %v3613_v40 = vcombine.high %v887_v30, %v891_v31  ;;  %v3741_v42 = vcombine.high %v1015_v35, %v1019_v36  ;;  %v963_v30 = vld [vmem:[#allocation11 + $0x338] sm:$0xff] }
 0x282   :  { %2669 = vmatprep.subr.bf16.mxu1 %v3795_v43  ;;  %v879_v43 = vld [vmem:[#allocation11 + $0x98] sm:$0xff] }
 0x283   :  { %v3604_v55 = vcombine.low %v879_v43, %v883_v44  ;;  %v1087_v31 = vld [vmem:[#allocation11 + $0x718] sm:$0xff] }
 0x284   :  { %2629 = vmatpush2.bf16.msra.mxu0 %v3666_v48  ;;  %v3740_v48 = vcombine.low %v1015_v35, %v1019_v36  ;;  %v1091_v35 = vld [vmem:[#allocation11 + $0x738] sm:$0xff] }
 0x285   :  { %2670 = vmatpush2.bf16.msra.mxu1 %v3794_v49  ;;  %2630 = vmatprep.subr.bf16.mxu0 %v3659_v50  ;;  %v3605_v49 = vcombine.high %v879_v43, %v883_v44  ;;  %v3733_v50 = vcombine.high %v1007_v45, %v1011_v46  ;;  %v955_v43 = vld [vmem:[#allocation11 + $0x2f8] sm:$0xff] }
 0x286   :  { %2671 = vmatprep.subr.bf16.mxu1 %v3787_v51  ;;  %v871_v51 = vld [vmem:[#allocation11 + $0x58] sm:$0xff] }
 0x287   :  { %v3596_v63 = vcombine.low %v871_v51, %v875_v52  ;;  %v1079_v44 = vld [vmem:[#allocation11 + $0x6d8] sm:$0xff] }
 0x288   :  { %2631 = vmatpush2.bf16.msra.mxu0 %v3658_v56  ;;  %v3732_v56 = vcombine.low %v1007_v45, %v1011_v46  ;;  %v1083_v45 = vld [vmem:[#allocation11 + $0x6f8] sm:$0xff] }
 0x289   :  { %2672 = vmatpush2.bf16.msra.mxu1 %v3786_v57  ;;  %2632 = vmatprep.subr.bf16.mxu0 %v3651_v58  ;;  %v3597_v57 = vcombine.high %v871_v51, %v875_v52  ;;  %v3725_v58 = vcombine.high %v999_v53, %v1003_v54  ;;  %v947_v51 = vld [vmem:[#allocation11 + $0x2b8] sm:$0xff] }
 0x28a   :  { %2673 = vmatprep.subr.bf16.mxu1 %v3779_v59  ;;  %v863_v59 = vld [vmem:[#allocation11 + $0x18] sm:$0xff] }
 0x28b   :  { %v3588_v9 = vcombine.low %v863_v59, %v867_v60  ;;  %v1071_v52 = vld [vmem:[#allocation11 + $0x698] sm:$0xff] }
 0x28c   :  { %2633 = vmatpush2.bf16.msra.mxu0 %v3650_v1  ;;  %v3724_v1 = vcombine.low %v999_v53, %v1003_v54  ;;  %v1075_v53 = vld [vmem:[#allocation11 + $0x6b8] sm:$0xff] }
 0x28d   :  { %2674 = vmatpush2.bf16.msra.mxu1 %v3778_v3  ;;  %2684 = vmatprep.subr.bf16.mxu0 %v3645_v4  ;;  %v3589_v3 = vcombine.high %v863_v59, %v867_v60  ;;  %v3717_v4 = vcombine.high %v991_v61, %v995_v62  ;;  %v939_v59 = vld [vmem:[#allocation11 + $0x278] sm:$0xff] }
 0x28e   :  { %2725 = vmatprep.subr.bf16.mxu1 %v3773_v5  ;;  %v983_v5 = vld [vmem:[#allocation11 + $0x3d8] sm:$0xff] }
 0x28f   :  { %2635 = vmatmul.mubr.bf16.vlgmr.msra.gmra.mxu0 %v4496_v32  ;;  %v3708_v17 = vcombine.low %v983_v5, %v987_v6  ;;  %v1063_v60 = vld [vmem:[#allocation11 + $0x658] sm:$0xff] }
 0x290   :  { %2676 = vmatmul.mubr.bf16.vlgmr.msra.gmra.mxu1 %v4500_v34  ;;  %2685 = vmatpush1.bf16.msra.mxu0 %v3644_v8  ;;  %v1115_v8 = vld [vmem:[#allocation11 + $0x7f8] sm:$0xff] }
 0x291   :  { %2716 = vmatprep.mubr.bf16.mxu0 %v4494_v28  ;;  %2726 = vmatpush1.bf16.msra.mxu1 %v3772_v11  ;;  %v3749_v28 = vcombine.high %v1023_v24, %v1027_v25  ;;  %v3709_v11 = vcombine.high %v983_v5, %v987_v6  ;;  %v1099_v24 = vld [vmem:[#allocation11 + $0x778] sm:$0xff]  ;;  %v3700_v25 = vcombine.low %v975_v13, %v979_v14 }
 0x292   :  { %2757 = vmatprep.mubr.bf16.mxu1 %v4498_v33  ;;  %2686 = vmatprep.subr.bf16.mxu0 %v3637_v12  ;;  %v3620_v33 = vcombine.low %v895_v22, %v899_v23  ;;  %v3837_v12 = vcombine.high %v1111_v7, %v1115_v8  ;;  %v971_v22 = vld [vmem:[#allocation11 + $0x378] sm:$0xff] }
 0x293   :  { %2727 = vmatprep.subr.bf16.mxu1 %v3765_v15  ;;  %v1103_v15 = vld [vmem:[#allocation11 + $0x798] sm:$0xff] }
 0x294   :  { %2687 = vmatpush1.bf16.msra.mxu0 %v3636_v18  ;;  %v3836_v18 = vcombine.low %v1111_v7, %v1115_v8  ;;  %v1095_v23 = vld [vmem:[#allocation11 + $0x758] sm:$0xff] }
 0x295   :  { %2728 = vmatpush1.bf16.msra.mxu1 %v3764_v19  ;;  %2688 = vmatprep.subr.bf16.mxu0 %v3629_v20  ;;  %v3701_v19 = vcombine.high %v975_v13, %v979_v14  ;;  %v3829_v20 = vcombine.high %v1103_v15, %v1107_v16  ;;  %v1067_v61 = vld [vmem:[#allocation11 + $0x678] sm:$0xff] }
 0x296   :  { %2729 = vmatprep.subr.bf16.mxu1 %v3757_v21  ;;  %v967_v21 = vld [vmem:[#allocation11 + $0x358] sm:$0xff] }
 0x297   :  { %v3692_v36 = vcombine.low %v967_v21, %v971_v22  ;;  %v931_v5 = vld [vmem:[#allocation11 + $0x238] sm:$0xff] }
 0x298   :  { %2689 = vmatpush1.bf16.msra.mxu0 %v3628_v26  ;;  %v3828_v26 = vcombine.low %v1103_v15, %v1107_v16  ;;  %v1055_v6 = vld [vmem:[#allocation11 + $0x618] sm:$0xff] }
 0x299   :  { %2730 = vmatpush1.bf16.msra.mxu1 %v3756_v27  ;;  %2690 = vmatprep.subr.bf16.mxu0 %v3621_v29  ;;  %v3693_v27 = vcombine.high %v967_v21, %v971_v22  ;;  %v3821_v29 = vcombine.high %v1095_v23, %v1099_v24  ;;  %v1059_v7 = vld [vmem:[#allocation11 + $0x638] sm:$0xff]  ;;  %v4148_v21 = vld [vmem:[#allocation13 + $0xf0] sm:$0xff]  }
 0x29a   :  { %2731 = vmatprep.subr.bf16.mxu1 %v3749_v28  ;;  %v959_v28 = vld [vmem:[#allocation11 + $0x318] sm:$0xff]  ;;  %v3780_v13 = vcombine.low %v1055_v6, %v1059_v7 }
 0x29b   :  { %v3684_v46 = vcombine.low %v959_v28, %v963_v30  ;;  %v4130_v14 = vld [vmem:[#allocation13 + $0x78] sm:$0xff]  }
 0x29c   :  { %2691 = vmatpush1.bf16.msra.mxu0 %v3620_v33  ;;  %v3820_v33 = vcombine.low %v1095_v23, %v1099_v24  ;;  %v4146_v15 = vld [vmem:[#allocation13 + $0xf8] sm:$0xff]   ;;  %v4133_v24 = vld [vmem:[#allocation13 + $0x30] sm:$0xff]  }
 0x29d   :  { %2732 = vmatpush1.bf16.msra.mxu1 %v3748_v37  ;;  %2692 = vmatprep.subr.bf16.mxu0 %v3613_v40  ;;  %v3685_v37 = vcombine.high %v959_v28, %v963_v30  ;;  %v3813_v40 = vcombine.high %v1087_v31, %v1091_v35  ;;  %v4131_v16 = vld [vmem:[#allocation13 + $0x38] sm:$0xff]   ;;  %v4150_v30 = vld [vmem:[#allocation13 + $0xe8] sm:$0xff]  }
 0x29e   :  { %2733 = vmatprep.subr.bf16.mxu1 %v3741_v42  ;;  %v951_v42 = vld [vmem:[#allocation11 + $0x2d8] sm:$0xff] }
 0x29f   :  { %v3676_v54 = vcombine.low %v951_v42, %v955_v43 }
 0x2a0   :  { %2693 = vmatpush1.bf16.msra.mxu0 %v3612_v47  ;;  %v3812_v47 = vcombine.low %v1087_v31, %v1091_v35 }
 0x2a1   :  { %2734 = vmatpush1.bf16.msra.mxu1 %v3740_v48  ;;  %2694 = vmatprep.subr.bf16.mxu0 %v3605_v49  ;;  %v3677_v48 = vcombine.high %v951_v42, %v955_v43  ;;  %v3805_v49 = vcombine.high %v1079_v44, %v1083_v45  ;;  %v4152_v42 = vld [vmem:[#allocation13 + $0xe0] sm:$0xff]  }
 0x2a2   :  { %2735 = vmatprep.subr.bf16.mxu1 %v3733_v50  ;;  %v943_v50 = vld [vmem:[#allocation11 + $0x298] sm:$0xff]  ;;  %v4137_v43 = vld [vmem:[#allocation13 + $0x20] sm:$0xff]  }
 0x2a3   :  { %v3668_v62 = vcombine.low %v943_v50, %v947_v51 }
 0x2a4   :  { %2695 = vmatpush1.bf16.msra.mxu0 %v3604_v55  ;;  %v3804_v55 = vcombine.low %v1079_v44, %v1083_v45 }
 0x2a5   :  { %2736 = vmatpush1.bf16.msra.mxu1 %v3732_v56  ;;  %2696 = vmatprep.subr.bf16.mxu0 %v3597_v57  ;;  %v3669_v56 = vcombine.high %v943_v50, %v947_v51  ;;  %v3797_v57 = vcombine.high %v1071_v52, %v1075_v53  ;;  %v4139_v50 = vld [vmem:[#allocation13 + $0x18] sm:$0xff]   ;;  %v4140_v51 = vld [vmem:[#allocation13 + $0x50] sm:$0xff]  }
 0x2a6   :  { %2737 = vmatprep.subr.bf16.mxu1 %v3725_v58  ;;  %v935_v58 = vld [vmem:[#allocation11 + $0x258] sm:$0xff] }
 0x2a7   :  { %v3660_v8 = vcombine.low %v935_v58, %v939_v59 }
 0x2a8   :  { %2697 = vmatpush1.bf16.msra.mxu0 %v3596_v63  ;;  %v3796_v63 = vcombine.low %v1071_v52, %v1075_v53  ;;  %v4155_v52 = vld [vmem:[#allocation13 + $0x98] sm:$0xff]  }
 0x2a9   :  { %2738 = vmatpush1.bf16.msra.mxu1 %v3724_v1  ;;  %2698 = vmatprep.subr.bf16.mxu0 %v3589_v3  ;;  %v3661_v1 = vcombine.high %v935_v58, %v939_v59  ;;  %v3789_v3 = vcombine.high %v1063_v60, %v1067_v61  ;;  %v4143_v59 = vld [vmem:[#allocation13 + $0x8] sm:$0xff]  }
 0x2aa   :  { %2739 = vmatprep.subr.bf16.mxu1 %v3717_v4  ;;  %v927_v4 = vld [vmem:[#allocation11 + $0x218] sm:$0xff] }
 0x2ac   :  { %2699 = vmatpush1.bf16.msra.mxu0 %v3588_v9  ;;  %v3788_v9 = vcombine.low %v1063_v60, %v1067_v61  ;;  %v4144_v60 = vld [vmem:[#allocation13 + $0x40] sm:$0xff]   ;;  %v4159_v61 = vld [vmem:[#allocation13 + $0x88] sm:$0xff]  }
 0x2ad   :  { %2740 = vmatpush1.bf16.msra.mxu1 %v3716_v10  ;;  %2700 = vmatprep.subr.bf16.mxu0 %v3709_v11  ;;  %v3653_v10 = vcombine.high %v927_v4, %v931_v5  ;;  %v3781_v11 = vcombine.high %v1055_v6, %v1059_v7  ;;  %v4178_v6 = vld [vmem:[#allocation13 + $0x1f8] sm:$0xff]  }
 0x2ae   :  { %2741 = vmatprep.subr.bf16.mxu1 %v3837_v12  ;;  %v3652_v12 = vcombine.low %v927_v4, %v931_v5  ;;  %v4162_v4 = vld [vmem:[#allocation13 + $0x178] sm:$0xff]  }
 0x2af   :  { %v4163_v7 = vld [vmem:[#allocation13 + $0x138] sm:$0xff]  }
 0x2b0   :  { %2701 = vmatpush2.bf16.msra.mxu0 %v3708_v17  ;;  %v4519_v17 = vld [vmem:[%s4555_s8] sm:$0xff] }
 0x2b1   :  { %2742 = vmatpush2.bf16.msra.mxu1 %v3836_v18  ;;  %2702 = vmatprep.subr.bf16.mxu0 %v3701_v19  ;;  %v4132_v18 = vld [vmem:[#allocation13 + $0x70] sm:$0xff]   ;;  %v4147_v19 = vld [vmem:[#allocation13 + $0xb8] sm:$0xff]  }
 0x2b2   :  { %2743 = vmatprep.subr.bf16.mxu1 %v3829_v20  ;;  %v1125_v20 = vrot.slane %v4519_v17, %v4479_v41 }
 0x2b4   :  { %2703 = vmatpush2.bf16.msra.mxu0 %v3700_v25 }
 0x2b5   :  { %2744 = vmatpush2.bf16.msra.mxu1 %v3828_v26  ;;  %2704 = vmatprep.subr.bf16.mxu0 %v3693_v27  ;;  %v4134_v26 = vld [vmem:[#allocation13 + $0x68] sm:$0xff]   ;;  %v4149_v27 = vld [vmem:[#allocation13 + $0xb0] sm:$0xff]  }
 0x2b6   :  { %2745 = vmatprep.subr.bf16.mxu1 %v3821_v29 }
 0x2b8   :  { %2705 = vmatpush2.bf16.msra.mxu0 %v3692_v36 }
 0x2b9   :  { %2746 = vmatpush2.bf16.msra.mxu1 %v3820_v33  ;;  %2706 = vmatprep.subr.bf16.mxu0 %v3685_v37  ;;  %v4151_v33 = vld [vmem:[#allocation13 + $0xa8] sm:$0xff]  }
 0x2ba   :  { %2747 = vmatprep.subr.bf16.mxu1 %v3813_v40 }
 0x2bc   :  { %2707 = vmatpush2.bf16.msra.mxu0 %v3684_v46  ;;  %v4138_v46 = vld [vmem:[#allocation13 + $0x58] sm:$0xff]  }
 0x2bd   :  { %2748 = vmatpush2.bf16.msra.mxu1 %v3812_v47  ;;  %2708 = vmatprep.subr.bf16.mxu0 %v3677_v48  ;;  %v4153_v47 = vld [vmem:[#allocation13 + $0xa0] sm:$0xff]   ;;  %v1121_v48 = vrot.slane %v4519_v17, %v4473_v39  ;;  %v4158_v39 = vld [vmem:[#allocation13 + $0xc8] sm:$0xff]  }
 0x2be   :  { %2749 = vmatprep.subr.bf16.mxu1 %v3805_v49  ;;  %v4154_v49 = vld [vmem:[#allocation13 + $0xd8] sm:$0xff]  }
 0x2c0   :  { %2709 = vmatpush2.bf16.msra.mxu0 %v3676_v54  ;;  %v4156_v54 = vld [vmem:[#allocation13 + $0xd0] sm:$0xff]  }
 0x2c1   :  { %2750 = vmatpush2.bf16.msra.mxu1 %v3804_v55  ;;  %2710 = vmatprep.subr.bf16.mxu0 %v3669_v56  ;;  %v4141_v55 = vld [vmem:[#allocation13 + $0x10] sm:$0xff]   ;;  %v4142_v56 = vld [vmem:[#allocation13 + $0x48] sm:$0xff]  }
 0x2c2   :  { %2751 = vmatprep.subr.bf16.mxu1 %v3797_v57  ;;  %v4157_v57 = vld [vmem:[#allocation13 + $0x90] sm:$0xff]  }
 0x2c4   :  { %2711 = vmatpush2.bf16.msra.mxu0 %v3668_v62 }
 0x2c5   :  { %2752 = vmatpush2.bf16.msra.mxu1 %v3796_v63  ;;  %2712 = vmatprep.subr.bf16.mxu0 %v3661_v1  ;;  %v4160_v63 = vld [vmem:[#allocation13 + $0xc0] sm:$0xff]  }
 0x2c6   :  { %2753 = vmatprep.subr.bf16.mxu1 %v3789_v3  ;;  %v4145_v1 = vld [vmem:[#allocation13] sm:$0xff]  }
 0x2c7   :  { %v4161_v3 = vld [vmem:[#allocation13 + $0x80] sm:$0xff]  }
 0x2c8   :  { %2713 = vmatpush2.bf16.msra.mxu0 %v3660_v8 }
 0x2c9   :  { %2754 = vmatpush2.bf16.msra.mxu1 %v3788_v9  ;;  %2714 = vmatprep.subr.bf16.mxu0 %v3653_v10  ;;  %v4164_v9 = vld [vmem:[#allocation13 + $0x170] sm:$0xff]  }
 0x2ca   :  { %2755 = vmatprep.subr.bf16.mxu1 %v3781_v11  ;;  %v4165_v10 = vld [vmem:[#allocation13 + $0x130] sm:$0xff]   ;;  %v4166_v11 = vld [vmem:[#allocation13 + $0x168] sm:$0xff]  }
 0x2cc   :  { %2715 = vmatpush2.bf16.msra.mxu0 %v3652_v12  ;;  %v4167_v12 = vld [vmem:[#allocation13 + $0x128] sm:$0xff]  }
 0x2cd   :  { %2756 = vmatpush2.bf16.msra.mxu1 %v3780_v13  ;;  %3903 = vmatprep.subr.bf16.mxu0 %v4130_v14  ;;  %v4168_v13 = vld [vmem:[#allocation13 + $0x160] sm:$0xff]  }
 0x2ce   :  { %3925 = vmatprep.subr.bf16.mxu1 %v4146_v15  ;;  %v4169_v14 = vld [vmem:[#allocation13 + $0x120] sm:$0xff]   ;;  %v4170_v15 = vld [vmem:[#allocation13 + $0x158] sm:$0xff]  }
 0x2cf   :  { %2717 = vmatmul.mubr.bf16.vlgmr.msra.gmra.mxu0 %v4496_v32  ;;  %v2472_v22 = vpop.f32.mrf.mxu0  ;;  %v4135_v32 = vld [vmem:[#allocation13 + $0x28] sm:$0xff]  }
 0x2d0   :  { %2758 = vmatmul.mubr.bf16.vlgmr.msra.gmra.mxu1 %v4500_v34  ;;  %v2513_v23 = vpop.f32.mrf.mxu1  ;;  %3904 = vmatpush3.bf16.msra.mxu0 %v4131_v16  ;;  %v4136_v34 = vld [vmem:[#allocation13 + $0x60] sm:$0xff]   ;;  %v2473_v53 = vadd.f32 %v2472_v22, %v1121_v48  ;;  %v4171_v16 = vld [vmem:[#allocation13 + $0x118] sm:$0xff]   ;;  %v4183_v48 = vld [vmem:[#allocation13 + $0x1a8] sm:$0xff]  }
 0x2d1   :  { %v2474_v25 = vpop.f32.mrf.mxu0  ;;  %3905 = vmatprep.subr.bf16.mxu0 %v4132_v18  ;;  %3926 = vmatpush3.bf16.msra.mxu1 %v4147_v19  ;;  %v4172_v18 = vld [vmem:[#allocation13 + $0x150] sm:$0xff]   ;;  %v4176_v22 = vld [vmem:[#allocation13 + $0x140] sm:$0xff]  }
 0x2d2   :  { %v2475_v29 = vadd.f32 %v2474_v25, %v1125_v20  ;;  %v2515_v28 = vpop.f32.mrf.mxu1  ;;  %3927 = vmatprep.subr.bf16.mxu1 %v4148_v21  ;;  %v2514_v58 = vadd.f32 %v2513_v23, %v2473_v53  ;;  %v4173_v19 = vld [vmem:[#allocation13 + $0x110] sm:$0xff]   ;;  %v4174_v20 = vld [vmem:[#allocation13 + $0x148] sm:$0xff]   ;;  %v4177_v23 = vld [vmem:[#allocation13 + $0x100] sm:$0xff]   ;;  %v1133_v25 = vrot.slane %v4519_v17, %v436_v2 }
 0x2d3   :  { %v2476_v41 = vpop.f32.mrf.mxu0  ;;  %v4175_v21 = vld [vmem:[#allocation13 + $0x108] sm:$0xff]   ;;  %v4179_v2 = vld [vmem:[#allocation13 + $0x1b8] sm:$0xff]   ;;  %v4188_v53 = vld [vmem:[#allocation13 + $0x1d0] sm:$0xff]  }
 0x2d4   :  { %v2516_v31 = vadd.f32 %v2515_v28, %v2475_v29  ;;  %v2517_v35 = vpop.f32.mrf.mxu1  ;;  %3906 = vmatpush3.bf16.msra.mxu0 %v4133_v24  ;;  %v2774_v62 = vmul.f32 0.2, %v2514_v58  ;;  %vm2766_vm10 = vcmp.gt.f32.partialorder %v2514_v58, 0.0  ;;  %v1129_v24 = vrot.slane %v4519_v17, %v432_v0 }
 0x2d5   :  { %v2477_v36 = vpop.f32.mrf.mxu0  ;;  %3907 = vmatprep.subr.bf16.mxu0 %v4134_v26  ;;  %3928 = vmatpush3.bf16.msra.mxu1 %v4149_v27 }
 0x2d6   :  { %vm2767_vm9 = vcmp.gt.f32.partialorder %v2516_v31, 0.0  ;;  %v2775_v37 = vmul.f32 0.2, %v2516_v31  ;;  %v2518_v40 = vpop.f32.mrf.mxu1  ;;  %3929 = vmatprep.subr.bf16.mxu1 %v4150_v30  ;;  %v2782_v5 = vsel %vm2766_vm10, %v2514_v58, %v2774_v62  ;;  %v4193_v58 = vld [vmem:[#allocation13 + $0x180] sm:$0xff]  }
 0x2d7   :  { %v2790_v8 = vpack.c.bf16 %v2782_v5, %v2782_v5 }
 0x2d8   :  { %3908 = vmatpush3.bf16.msra.mxu0 %v4135_v32  ;;  %v2783_v44 = vsel %vm2767_vm9, %v2516_v31, %v2775_v37 }
 0x2d9   :  { %3909 = vmatprep.subr.bf16.mxu0 %v4136_v34  ;;  %v2791_v45 = vpack.c.bf16 %v2783_v44, %v2783_v44  ;;  %3930 = vmatpush3.bf16.msra.mxu1 %v4151_v33 }
 0x2da   :  { %3931 = vmatprep.subr.bf16.mxu1 %v4152_v42 }
 0x2db   :  { %3349 = vmatprep.mubr.bf16.mxu0 %v2791_v45  ;;  %v4180_v45 = vld [vmem:[#allocation13 + $0x1f0] sm:$0xff]  }
 0x2dc   :  { %3910 = vmatpush3.bf16.msra.mxu0 %v4137_v43 }
 0x2dd   :  { %3911 = vmatprep.subr.bf16.mxu0 %v4138_v46  ;;  %3932 = vmatpush3.bf16.msra.mxu1 %v4153_v47  ;;  %v4181_v46 = vld [vmem:[#allocation13 + $0x1b0] sm:$0xff]   ;;  %v4182_v47 = vld [vmem:[#allocation13 + $0x1e8] sm:$0xff]  }
 0x2de   :  { %3933 = vmatprep.subr.bf16.mxu1 %v4154_v49  ;;  %v4184_v49 = vld [vmem:[#allocation13 + $0x1e0] sm:$0xff]  }
 0x2e0   :  { %3912 = vmatpush3.bf16.msra.mxu0 %v4139_v50  ;;  %v4185_v50 = vld [vmem:[#allocation13 + $0x1a0] sm:$0xff]  }
 0x2e1   :  { %3913 = vmatprep.subr.bf16.mxu0 %v4140_v51  ;;  %3934 = vmatpush3.bf16.msra.mxu1 %v4155_v52  ;;  %v4186_v51 = vld [vmem:[#allocation13 + $0x1d8] sm:$0xff]  }
 0x2e2   :  { %3935 = vmatprep.subr.bf16.mxu1 %v4156_v54  ;;  %v4187_v52 = vld [vmem:[#allocation13 + $0x198] sm:$0xff]   ;;  %v4189_v54 = vld [vmem:[#allocation13 + $0x190] sm:$0xff]  }
 0x2e4   :  { %3914 = vmatpush3.bf16.msra.mxu0 %v4141_v55  ;;  %v4190_v55 = vld [vmem:[#allocation13 + $0x1c8] sm:$0xff]  }
 0x2e5   :  { %3915 = vmatprep.subr.bf16.mxu0 %v4142_v56  ;;  %3936 = vmatpush3.bf16.msra.mxu1 %v4157_v57  ;;  %v4191_v56 = vld [vmem:[#allocation13 + $0x188] sm:$0xff]   ;;  %v4192_v57 = vld [vmem:[#allocation13 + $0x1c0] sm:$0xff]  }
 0x2e6   :  { %3937 = vmatprep.subr.bf16.mxu1 %v4158_v39  ;;  %v1136_v39 = vsub.s32 4, %v4470_v38 }
 0x2e8   :  { %3916 = vmatpush3.bf16.msra.mxu0 %v4143_v59  ;;  %v1140_v59 = vsub.s32 5, %v4470_v38 }
 0x2e9   :  { %3917 = vmatprep.subr.bf16.mxu0 %v4144_v60  ;;  %3938 = vmatpush3.bf16.msra.mxu1 %v4159_v61  ;;  %v1137_v60 = vrot.slane %v4519_v17, %v1136_v39 }
 0x2ea   :  { %3939 = vmatprep.subr.bf16.mxu1 %v4160_v63  ;;  %v1141_v61 = vrot.slane %v4519_v17, %v1140_v59 }
 0x2ec   :  { %3918 = vmatpush3.bf16.msra.mxu0 %v4145_v1 }
 0x2ed   :  { %3940 = vmatpush3.bf16.msra.mxu1 %v4161_v3  ;;  %3947 = vmatprep.subr.bf16.mxu0 %v4162_v4 }
 0x2ee   :  { %3969 = vmatprep.subr.bf16.mxu1 %v4178_v6 }
 0x2ef   :  { %3350 = vmatmul.mubr.bf16.vlgmr.msra.gmra.mxu0 %v2790_v8 }
 0x2f0   :  { %3948 = vmatpush3.bf16.msra.mxu0 %v4163_v7 }
 0x2f1   :  { %3949 = vmatprep.subr.bf16.mxu0 %v4164_v9 }
 0x2f4   :  { %3950 = vmatpush3.bf16.msra.mxu0 %v4165_v10 }
 0x2f5   :  { %3951 = vmatprep.subr.bf16.mxu0 %v4166_v11 }
 0x2f8   :  { %3952 = vmatpush3.bf16.msra.mxu0 %v4167_v12 }
 0x2f9   :  { %3953 = vmatprep.subr.bf16.mxu0 %v4168_v13 }
 0x2fc   :  { %3954 = vmatpush3.bf16.msra.mxu0 %v4169_v14 }
 0x2fd   :  { %3955 = vmatprep.subr.bf16.mxu0 %v4170_v15 }
 0x300   :  { %3956 = vmatpush3.bf16.msra.mxu0 %v4171_v16 }
 0x301   :  { %3957 = vmatprep.subr.bf16.mxu0 %v4172_v18 }
 0x304   :  { %3958 = vmatpush3.bf16.msra.mxu0 %v4173_v19  ;;  %v1144_v19 = vsub.s32 6, %v4470_v38 }
 0x305   :  { %3959 = vmatprep.subr.bf16.mxu0 %v4174_v20  ;;  %v1148_v20 = vsub.s32 7, %v4470_v38 }
 0x308   :  { %3960 = vmatpush3.bf16.msra.mxu0 %v4175_v21  ;;  %v1145_v21 = vrot.slane %v4519_v17, %v1144_v19 }
 0x309   :  { %3961 = vmatprep.subr.bf16.mxu0 %v4176_v22  ;;  %v1149_v22 = vrot.slane %v4519_v17, %v1148_v20 }
 0x30c   :  { %3962 = vmatpush3.bf16.msra.mxu0 %v4177_v23 }
 0x30f   :  { %v2554_v26 = vpop.f32.mrf.mxu0 }
 0x310   :  { %v2555_v27 = vadd.f32 %v2554_v26, %v1129_v24  ;;  %v2595_v29 = vpop.f32.mrf.mxu1 }
 0x311   :  { %v2556_v28 = vpop.f32.mrf.mxu0 }
 0x312   :  { %v2596_v30 = vadd.f32 %v2595_v29, %v2555_v27  ;;  %v2557_v41 = vadd.f32 %v2556_v28, %v1133_v25  ;;  %v2597_v31 = vpop.f32.mrf.mxu1 }
 0x313   :  { %v2558_v35 = vpop.f32.mrf.mxu0 }
 0x314   :  { %vm2768_vm11 = vcmp.gt.f32.partialorder %v2596_v30, 0.0  ;;  %v2776_v32 = vmul.f32 0.2, %v2596_v30  ;;  %v2598_v36 = vadd.f32 %v2597_v31, %v2557_v41  ;;  %v2599_v34 = vpop.f32.mrf.mxu1 }
 0x315   :  { %v2559_v33 = vpop.f32.mrf.mxu0 }
 0x316   :  { %vm2769_vm12 = vcmp.gt.f32.partialorder %v2598_v36, 0.0  ;;  %v2777_v0 = vmul.f32 0.2, %v2598_v36  ;;  %v2600_v37 = vpop.f32.mrf.mxu1  ;;  %v2784_v40 = vsel %vm2768_vm11, %v2596_v30, %v2776_v32 }
 0x317   :  { %v2792_v44 = vpack.c.bf16 %v2784_v40, %v2784_v40 }
 0x318   :  { %v2785_v42 = vsel %vm2769_vm12, %v2598_v36, %v2777_v0 }
 0x319   :  { %v2793_v43 = vpack.c.bf16 %v2785_v42, %v2785_v42 }
 0x31b   :  { %3389 = vmatprep.mubr.bf16.mxu1 %v2793_v43 }
 0x31c   :  { %3390 = vmatmul.mubr.bf16.vlgmr.msra.gmra.mxu1 %v2792_v44  ;;  %v3838_v44 = vld [vmem:[%s4557_s10] ss:$0 sm:$0xff]  ;;  %s4382_s10 = smov [#allocation14]  }
 0x31d   :  { %3970 = vmatpush3.bf16.msra.mxu1 %v4179_v2  ;;  %s3485_s19 = sshll.u32 %s4382_s10, 4  ;;  %s3486_s19 = int_to_ptr.vmem [resolvable:$true] %s3485_s19 }
 0x31e   :  { %3971 = vmatprep.subr.bf16.mxu1 %v4180_v45  ;;  %s4336_s3 = scalar_lea.vmem %s3486_s19, 128  ;;  %p4341_p8 = scmp.lt.s32.totalorder %s3486_s19, %s3486_s19 }
 0x31f   :  { %p4337_p7 = scmp.ne.s32.totalorder %s3486_s19, %s4336_s3  ;;  %p4342_p9 = scmp.lt.s32.totalorder %s4336_s3, %s4336_s3 }
 0x321   :  { %3972 = vmatpush3.bf16.msra.mxu1 %v4181_v46  ;;  %p4343_p10 = por %p4342_p9, %p4341_p8 }
 0x322   :  { %3973 = vmatprep.subr.bf16.mxu1 %v4182_v47 }
 0x323   :  { %p4344_p11 = pnand %p4343_p10, %p4337_p7 }
 0x325   :  { %3974 = vmatpush3.bf16.msra.mxu1 %v4183_v48 }
 0x326   :  { %3975 = vmatprep.subr.bf16.mxu1 %v4184_v49 }
 0x329   :  { %3976 = vmatpush3.bf16.msra.mxu1 %v4185_v50 }
 0x32a   :  { %3977 = vmatprep.subr.bf16.mxu1 %v4186_v51 }
 0x32d   :  { %3978 = vmatpush3.bf16.msra.mxu1 %v4187_v52 }
 0x32e   :  { %3979 = vmatprep.subr.bf16.mxu1 %v4188_v53 }
 0x331   :  { %3980 = vmatpush3.bf16.msra.mxu1 %v4189_v54 }
 0x332   :  { %3981 = vmatprep.subr.bf16.mxu1 %v4190_v55 }
 0x335   :  { %3982 = vmatpush3.bf16.msra.mxu1 %v4191_v56 }
 0x336   :  { %3983 = vmatprep.subr.bf16.mxu1 %v4192_v57 }
 0x339   :  { %3984 = vmatpush3.bf16.msra.mxu1 %v4193_v58 }
 0x34f   :  { %v2636_v62 = vpop.f32.mrf.mxu0 }
 0x350   :  { %v2637_v63 = vadd.f32 %v2636_v62, %v1137_v60  ;;  %v2677_v1 = vpop.f32.mrf.mxu1 }
 0x351   :  { %v2638_v3 = vpop.f32.mrf.mxu0 }
 0x352   :  { %v2678_v4 = vadd.f32 %v2677_v1, %v2637_v63  ;;  %v2639_v5 = vadd.f32 %v2638_v3, %v1141_v61  ;;  %v2679_v6 = vpop.f32.mrf.mxu1 }
 0x353   :  { %v2640_v7 = vpop.f32.mrf.mxu0 }
 0x354   :  { %vm2770_vm13 = vcmp.gt.f32.partialorder %v2678_v4, 0.0  ;;  %v2778_v8 = vmul.f32 0.2, %v2678_v4  ;;  %v2680_v9 = vadd.f32 %v2679_v6, %v2639_v5  ;;  %v2681_v10 = vpop.f32.mrf.mxu1 }
 0x355   :  { %v2641_v11 = vpop.f32.mrf.mxu0 }
 0x356   :  { %vm2771_vm14 = vcmp.gt.f32.partialorder %v2680_v9, 0.0  ;;  %v2779_v12 = vmul.f32 0.2, %v2680_v9  ;;  %v2682_v13 = vpop.f32.mrf.mxu1  ;;  %v2786_v14 = vsel %vm2770_vm13, %v2678_v4, %v2778_v8 }
 0x357   :  { %v2794_v18 = vpack.c.bf16 %v2786_v14, %v2786_v14 }
 0x358   :  { %v2787_v15 = vsel %vm2771_vm14, %v2680_v9, %v2779_v12 }
 0x359   :  { %v2795_v16 = vpack.c.bf16 %v2787_v15, %v2787_v15 }
 0x35b   :  { %3429 = vmatprep.mubr.bf16.mxu0 %v2795_v16 }
 0x35c   :  { %3430 = vmatmul.mubr.bf16.vlgmr.msra.gmra.mxu0 %v2794_v18 }
 0x38f   :  { %v2718_v23 = vpop.f32.mrf.mxu0 }
 0x390   :  { %v2719_v24 = vadd.f32 %v2718_v23, %v1145_v21  ;;  %v2759_v25 = vpop.f32.mrf.mxu1 }
 0x391   :  { %v2720_v26 = vpop.f32.mrf.mxu0 }
 0x392   :  { %v2760_v27 = vadd.f32 %v2759_v25, %v2719_v24  ;;  %v2721_v29 = vadd.f32 %v2720_v26, %v1149_v22  ;;  %v2761_v28 = vpop.f32.mrf.mxu1 }
 0x393   :  { %v2722_v30 = vpop.f32.mrf.mxu0 }
 0x394   :  { %vm2772_vm15 = vcmp.gt.f32.partialorder %v2760_v27, 0.0  ;;  %v2780_v41 = vmul.f32 0.2, %v2760_v27  ;;  %v2762_v31 = vadd.f32 %v2761_v28, %v2721_v29  ;;  %v2763_v35 = vpop.f32.mrf.mxu1 }
 0x395   :  { %v2723_v32 = vpop.f32.mrf.mxu0 }
 0x396   :  { %vm2773_vm0 = vcmp.gt.f32.partialorder %v2762_v31, 0.0  ;;  %v2781_v36 = vmul.f32 0.2, %v2762_v31  ;;  %v2764_v38 = vpop.f32.mrf.mxu1  ;;  %v2788_v34 = vsel %vm2772_vm15, %v2760_v27, %v2780_v41 }
 0x397   :  { %v2796_v17 = vpack.c.bf16 %v2788_v34, %v2788_v34 }
 0x398   :  { %v2789_v33 = vsel %vm2773_vm0, %v2762_v31, %v2781_v36 }
 0x399   :  { %v2797_v0 = vpack.c.bf16 %v2789_v33, %v2789_v33 }
 0x39b   :  { %3469 = vmatprep.mubr.bf16.mxu1 %v2797_v0 }
 0x39c   :  { %3470 = vmatmul.mubr.bf16.vlgmr.msra.gmra.mxu1 %v2796_v17 }
 0x3af   :  { %v3919_v37 = vpop.f32.mrf.mxu0 }
 0x3b1   :  { %v3920_v40 = vpop.f32.mrf.mxu0 }
 0x3b2   :  { %v3921_v42 = vadd.f32 %v3920_v40, %v3919_v37 }
 0x3b3   :  { %v3922_v43 = vpop.f32.mrf.mxu0 }
 0x3b4   :  { %v3352_v47 = vadd.f32 %v3921_v42, %v3838_v44 }
 0x3b5   :  { %v3923_v2 = vpop.f32.mrf.mxu0 }
 0x3dc   :  { %v3941_v45 = vpop.f32.mrf.mxu1 }
 0x3de   :  { %v3942_v46 = vpop.f32.mrf.mxu1 }
 0x3df   :  { %v3943_v48 = vadd.f32 %v3942_v46, %v3941_v45 }
 0x3e0   :  { %v3944_v49 = vpop.f32.mrf.mxu1 }
 0x3e1   :  { %v3392_v50 = vadd.f32 %v3943_v48, %v3352_v47 }
 0x3e2   :  { %v3945_v51 = vpop.f32.mrf.mxu1 }
 0x41c   :  { %v3963_v52 = vpop.f32.mrf.mxu0 }
 0x41e   :  { %v3964_v53 = vpop.f32.mrf.mxu0 }
 0x41f   :  { %v3965_v54 = vadd.f32 %v3964_v53, %v3963_v52 }
 0x420   :  { %v3966_v55 = vpop.f32.mrf.mxu0 }
 0x421   :  { %v3432_v56 = vadd.f32 %v3965_v54, %v3392_v50 }
 0x422   :  { %v3967_v57 = vpop.f32.mrf.mxu0 }
 0x45c   :  { %v3985_v58 = vpop.f32.mrf.mxu1 }
 0x45e   :  { %v3986_v39 = vpop.f32.mrf.mxu1 }
 0x45f   :  { %v3987_v59 = vadd.f32 %v3986_v39, %v3985_v58 }
 0x460   :  { %v3988_v60 = vpop.f32.mrf.mxu1 }
 0x461   :  { %v3472_v61 = vadd.f32 %v3987_v59, %v3432_v56 }
 0x462   :  { %v3989_v62 = vpop.f32.mrf.mxu1 }
 0x463   :  { %4194 = vtanh.f32 %v3472_v61 }
 0x470   :  { %v4195_v63 = vpop.eup %4194 }
 0x471   :  { %3478 = vst [vmem:[#allocation14] sm:$0xff] %v4195_v63 }
 0x472   :  { %4347 = shalt.err (!%p4344_p11)
}
 0x473   :  { %3488 = dma.vmem_to_hbm [thread:$0]  %s3486_s19, 128, %s4558_s11, [#allocation4]  }
 0x474   :  { %4364 = dma.done.wait [#allocation4], 128  }
 0x475   :  { %4365 = vsyncadd [#allocation4], 4294967168 }
 0x476   :  { %3492 = vsyncpa [#allocation3], 1 }
 0x477   :  { %3493 = vsyncpa [#allocation6], 1 }
 0x478   :  { %3494 = vsyncpa [#allocation9], 1 }
 0x479   :  { %3495 = vsyncpa [#allocation12], 1 }
 0x47a   :  { %3496 = vsyncpa [#allocation4], 1 }

</bundles_post_ra>
